<compile_context>
chip_gen: v7x
topology: tpu7x:2x2x1
jax: 0.10.0
libtpu: 0.0.40
codegen_flags: <defaults>
</compile_context>

<pallas_src>
import functools

import jax
import jax.numpy as jnp
from jax import lax
from jax.experimental import pallas as pl
from jax.experimental.pallas import tpu as pltpu

_EPS = 1e-5                       # nn.LayerNorm default eps
_SQRT_HALF = 0.7071067811865476   # 1/sqrt(2)


# ----------------------------------------------------------------------------
# Elementwise helpers (shared by the kernel and the pure-JAX reference).
# ----------------------------------------------------------------------------
def _layer_norm(x, gamma, beta):
    """LayerNorm over the last axis; single-pass stats (centered slab reused)."""
    mu = jnp.mean(x, axis=-1, keepdims=True)
    xc = x - mu
    var = jnp.mean(xc * xc, axis=-1, keepdims=True)
    return xc * lax.rsqrt(var + _EPS) * gamma + beta


def _erf_poly(z):
    """erf via Abramowitz & Stegun 7.1.26 (|err| <= 1.5e-7).

    Uses only abs/mul/add/div/exp so it lowers on every TPU generation
    (avoids depending on an erf primitive lowering inside the kernel).
    """
    a1, a2, a3, a4, a5 = (0.254829592, -0.284496736, 1.421413741,
                          -1.453152027, 1.061405429)
    p = 0.3275911
    za = jnp.abs(z)
    t = 1.0 / (1.0 + p * za)
    poly = ((((a5 * t + a4) * t + a3) * t + a2) * t + a1) * t
    y = 1.0 - poly * jnp.exp(-za * za)
    return jnp.where(z < 0, -y, y)


def _gelu(x, approximate):
    if approximate:
        # tanh-GELU: routes through the EUP slot (useful on v5e where the
        # exact-erf polynomial would load the 4 VALU slots).  Diverges from
        # nn.GELU() exact numerics by up to ~3e-3.
        return jax.nn.gelu(x, approximate=True)
    # Exact GELU (matches nn.GELU() to ~1.5e-7).
    return 0.5 * x * (1.0 + _erf_poly(x * _SQRT_HALF))


# ----------------------------------------------------------------------------
# Kernel
# ----------------------------------------------------------------------------
def _mixer_block_kernel(x_ref,
                        g1_ref, b1_ref,          # pre  LayerNorm (f32, (1, D))
                        g2_ref, b2_ref,          # post LayerNorm (f32, (1, D))
                        wt1_ref, bt1_ref,        # token mixer Linear(P->D): W (D, P) bf16, b (D, 1) f32
                        wt2_ref, bt2_ref,        # token mixer Linear(D->P): W (P, D) bf16, b (P, 1) f32
                        wc1_ref, bc1_ref,        # channel mixer Linear(D->D): W.T (D, D) bf16, b (1, D) f32
                        wc2_ref, bc2_ref,        # channel mixer Linear(D->D): W.T (D, D) bf16, b (1, D) f32
                        out_ref,
                        *, approximate_gelu):
    Bt, P, D = x_ref.shape
    f32 = jnp.float32
    bf16 = jnp.bfloat16

    # Canonical batched matmul 'bmk,bkn->bmn': batch dims (0,0), contracting
    # dims (2,1).  This is the only rank-3 dot_general form we emit — it maps
    # straight onto the MXU with no transposes or layout-change copies.
    bmm_dims = (((2,), (1,)), ((0,), (0,)))

    def bmm(a, b):
        return lax.dot_general(a, b, dimension_numbers=bmm_dims,
                               preferred_element_type=f32)

    x = x_ref[...]
    if x.dtype != f32:            # avoid a redundant full-slab cast for f32 inputs
        x = x.astype(f32)

    # Shared weights, broadcast across the block-batch ONCE per grid step
    # (hoisted; a batched dot_general needs matching leading batch dims).
    wt1 = jnp.broadcast_to(wt1_ref[...], (Bt,) + tuple(wt1_ref.shape))  # (Bt, D, P)
    wt2 = jnp.broadcast_to(wt2_ref[...], (Bt,) + tuple(wt2_ref.shape))  # (Bt, P, D)
    wc1 = jnp.broadcast_to(wc1_ref[...], (Bt,) + tuple(wc1_ref.shape))  # (Bt, D, D)
    wc2 = jnp.broadcast_to(wc2_ref[...], (Bt,) + tuple(wc2_ref.shape))  # (Bt, D, D)

    # ---- token mixer:  LN -> Linear(P->D) -> GELU -> Linear(D->P) ----------
    pre = _layer_norm(x, g1_ref[...], b1_ref[...])                       # (Bt, P, D) f32
    # h[b,e,d] = sum_p W1[e,p] * pre[b,p,d]   (W1 in native (D,P) layout)
    h = bmm(wt1, pre.astype(bf16)) + bt1_ref[...]                        # (Bt, D, D); bias over e
    h = _gelu(h, approximate_gelu)
    # t[b,p,d] = sum_e W2[p,e] * h[b,e,d]  -> already (P, D) oriented
    t = bmm(wt2, h.astype(bf16)) + bt2_ref[...]                          # (Bt, P, D); bias over p
    tm = t + x                                                           # residual, pure SSA (no scratch)

    # ---- channel mixer: LN -> Linear(D->D) -> GELU -> Linear(D->D) ---------
    post = _layer_norm(tm, g2_ref[...], b2_ref[...])                     # (Bt, P, D)
    c = bmm(post.astype(bf16), wc1) + bc1_ref[...]                       # (Bt, P, D)
    c = _gelu(c, approximate_gelu)
    c = bmm(c.astype(bf16), wc2) + bc2_ref[...]                          # (Bt, P, D)

    out_ref[...] = (c + tm).astype(out_ref.dtype)                        # lane-dense store (last dim = D)


# ----------------------------------------------------------------------------
# Generation-aware sizing heuristics
# ----------------------------------------------------------------------------
def _tpu_generation_hints():
    """Returns (vmem_capacity_bytes, assumed tensorcores per chip).

    v5e/v6e: 128 MiB VMEM, 1 TensorCore; v7x-class: 64 MiB, 2 TensorCores.
    The TC count is keyed off the VMEM capacity (stable field); falls back to
    conservative values if the query is unavailable.
    """
    try:
        vmem = int(pltpu.get_tpu_info().vmem_capacity_bytes)
    except Exception:
        vmem = 64 * 1024 * 1024
    n_cores = 2 if vmem <= 96 * 1024 * 1024 else 1
    return vmem, n_cores


def _weight_bytes(P, D):
    # bf16 matmul weights only (biases / LN params are tiny).
    return 2 * (D * P + P * D + 2 * D * D)


def _vmem_estimate(bt, P, D, x_itemsize):
    blk = bt * P * D
    io = 2 * 2 * blk * x_itemsize                  # double-buffered in + out blocks
    f32_work = (4 * blk + 2 * bt * D * D) * 4      # LN/residual slabs + token-mixer hidden
    w = _weight_bytes(P, D)
    return io + f32_work + 2 * w + bt * w          # dbl-buffered weights + per-batch broadcast


def _pick_block_batch(B, P, D, x_itemsize, *, vmem_budget, n_cores):
    """Largest divisor of B that fits the VMEM budget.

    On 2-TensorCore chips (v7x-class) Bt is capped at 4 and we keep >= n_cores
    grid steps so the 'parallel' batch axis feeds every core; on single-core
    chips (v5e/v6e) we allow Bt up to 8 (often Bt=B for small B) since extra
    grid steps only add per-step overhead there.
    """
    max_bt = 4 if n_cores > 1 else 8
    best = 1
    for bt in range(1, min(B, max_bt) + 1):
        if B % bt:
            continue
        if n_cores > 1 and B >= n_cores and (B // bt) < n_cores:
            continue
        if _vmem_estimate(bt, P, D, x_itemsize) > vmem_budget:
            continue
        best = bt
    return best


# ----------------------------------------------------------------------------
# Wrapper
# ----------------------------------------------------------------------------
def mixer_block(x, params, *, block_batch=None, approximate_gelu=False):
    """x: (B, P, D); params: tuple of 12 2-D arrays (see kernel signature)."""
    B, P, D = x.shape

    vmem_cap, n_cores = _tpu_generation_hints()
    # Scoped VMEM limit: ~48 MiB leaves headroom on v7x's 64 MiB physical VMEM;
    # on 128-MiB chips (v5e/v6e) go larger so big single-step tiles fit.
    vmem_limit = (48 if n_cores > 1 else 96) * 1024 * 1024
    vmem_limit = min(vmem_limit, max(vmem_cap - 8 * 1024 * 1024, 16 * 1024 * 1024))

    if block_batch is not None:
        Bt = block_batch
    else:
        Bt = _pick_block_batch(B, P, D, x.dtype.itemsize,
                               vmem_budget=(3 * vmem_limit) // 4,
                               n_cores=n_cores)
    if B % Bt:
        raise ValueError(f"block_batch={Bt} must divide B={B}")
    grid = (B // Bt,)

    # Grid-invariant parameter specs (index_map never changes -> fetched once).
    # When the double-buffered weight footprint is large (realistic D), request
    # single buffering for the big weights: the second buffer is pure waste and
    # matters most against v7x's 64 MiB VMEM.  At demo sizes this is skipped.
    single_buffer = 2 * _weight_bytes(P, D) > 4 * 1024 * 1024

    def param_spec(p, is_big_weight):
        if is_big_weight and single_buffer:
            return pl.BlockSpec(p.shape, lambda b: (0, 0),
                                pipeline_mode=pl.Buffered(1))
        return pl.BlockSpec(p.shape, lambda b: (0, 0))

    big_weight_idx = {4, 6, 8, 10}   # wt1, wt2, wc1, wc2 within `params`
    in_specs = [pl.BlockSpec((Bt, P, D), lambda b: (b, 0, 0))]
    in_specs += [param_spec(p, i in big_weight_idx) for i, p in enumerate(params)]
    out_spec = pl.BlockSpec((Bt, P, D), lambda b: (b, 0, 0))

    # Advisory cost estimate (4 matmuls of 2*P*D*D each; one exp per GELU elem).
    flops = int(8 * B * P * D * D)
    transcendentals = int(B * D * (D + P))
    bytes_accessed = int(2 * x.size * x.dtype.itemsize
                         + sum(int(p.size) * p.dtype.itemsize for p in params))

    kernel = functools.partial(_mixer_block_kernel,
                               approximate_gelu=approximate_gelu)
    return pl.pallas_call(
        kernel,
        out_shape=jax.ShapeDtypeStruct((B, P, D), x.dtype),
        grid=grid,
        in_specs=in_specs,
        out_specs=out_spec,
        compiler_params=pltpu.CompilerParams(
            dimension_semantics=("parallel",),
            vmem_limit_bytes=vmem_limit),
        cost_estimate=pl.CostEstimate(flops=flops,
                                      transcendentals=transcendentals,
                                      bytes_accessed=bytes_accessed),
    )(x, *params)


# ----------------------------------------------------------------------------
# Parameter init (PyTorch-compatible shapes / init ranges)
# ----------------------------------------------------------------------------
def init_params(key, dim, num_patches):
    """Deterministic init matching the PyTorch module.

    Matmul weights are bf16:
      wt1: (dim, num_patches)  == native PyTorch W of Linear(num_patches, dim)
      wt2: (num_patches, dim)  == native PyTorch W of Linear(dim, num_patches)
      wc1, wc2: (dim, dim)     == W.T of Linear(dim, dim)   (lane-dense)
    Biases: bt1 (dim, 1), bt2 (num_patches, 1), bc1/bc2 (1, dim), all f32.
    LayerNorms: weight=1, bias=0 (PyTorch default), f32.
    """
    ks = jax.random.split(key, 4)

    def linear(k, fan_in, w_shape, b_shape):
        bound = float(fan_in) ** -0.5
        kw, kb = jax.random.split(k)
        w = jax.random.uniform(kw, w_shape, jnp.float32, -bound, bound)
        b = jax.random.uniform(kb, b_shape, jnp.float32, -bound, bound)
        return w.astype(jnp.bfloat16), b

    g1 = jnp.ones((1, dim), jnp.float32)
    b1 = jnp.zeros((1, dim), jnp.float32)
    g2 = jnp.ones((1, dim), jnp.float32)
    b2 = jnp.zeros((1, dim), jnp.float32)

    wt1, bt1 = linear(ks[0], num_patches, (dim, num_patches), (dim, 1))   # Linear(P -> D)
    wt2, bt2 = linear(ks[1], dim, (num_patches, dim), (num_patches, 1))   # Linear(D -> P)
    wc1, bc1 = linear(ks[2], dim, (dim, dim), (1, dim))                   # Linear(D -> D)
    wc2, bc2 = linear(ks[3], dim, (dim, dim), (1, dim))                   # Linear(D -> D)

    return (g1, b1, g2, b2, wt1, bt1, wt2, bt2, wc1, bc1, wc2, bc2)


# ----------------------------------------------------------------------------
# Pure-JAX reference
# ----------------------------------------------------------------------------
def mixer_block_ref(x, params, *, quantize_matmul_inputs=True,
                    approximate_gelu=False):
    """With quantize_matmul_inputs=True this mirrors the kernel's math exactly
    (bf16 matmul inputs, f32 accumulation, erf-polynomial GELU); with False it
    is the full-f32 module math with true nn.GELU()."""
    (g1, b1, g2, b2, wt1, bt1, wt2, bt2, wc1, bc1, wc2, bc2) = params
    f32 = jnp.float32
    prec = jax.lax.Precision.HIGHEST
    if quantize_matmul_inputs:
        q = lambda a: a.astype(jnp.bfloat16).astype(f32)
        act = lambda v: _gelu(v, approximate_gelu)
    else:
        q = lambda a: a.astype(f32)
        act = lambda v: jax.nn.gelu(v, approximate=approximate_gelu)

    x = x.astype(f32)
    pre = _layer_norm(x, g1, b1)
    h = jnp.einsum('ep,bpd->bed', q(wt1), q(pre), precision=prec) + bt1   # (B, D, D)
    h = act(h)
    t = jnp.einsum('pe,bed->bpd', q(wt2), q(h), precision=prec) + bt2     # (B, P, D)
    tm = t + x
    post = _layer_norm(tm, g2, b2)
    c = act(jnp.einsum('bpd,de->bpe', q(post), q(wc1), precision=prec) + bc1)
    c = jnp.einsum('bpd,de->bpe', q(c), q(wc2), precision=prec) + bc2
    return c + tm


if __name__ == "__main__":
    # Small but lane/sublane-aligned shapes: batch=4, num_patches=8, dim=128.
    B, P, D = 4, 8, 128

    key = jax.random.PRNGKey(0)
    kx, kp = jax.random.split(key)
    x = jax.random.normal(kx, (B, P, D), jnp.float32)
    params = init_params(kp, dim=D, num_patches=P)

    out = jax.block_until_ready(mixer_block(x, params))
    assert out.shape == (B, P, D)

    # Strict check vs. a reference using identical math (bf16 matmul inputs,
    # f32 accumulation, f32 LayerNorm, same GELU formula).
    ref_same = mixer_block_ref(x, params, quantize_matmul_inputs=True)
    assert jnp.allclose(out, ref_same, atol=2e-3, rtol=2e-3), \
        "mismatch vs bf16-matmul reference"

    # Loose check vs. the full-f32 module math (only bf16 matmul rounding and
    # the ~1.5e-7 erf-polynomial error differ).
    ref_f32 = mixer_block_ref(x, params, quantize_matmul_inputs=False)
    assert jnp.allclose(out, ref_f32, atol=1e-1, rtol=1e-1), \
        "mismatch vs f32 reference"

    print("KERNEL_OK")
</pallas_src>

<mosaic_0001>
module attributes {stable_mosaic.version = 11 : i64} {
  func.func @_mixer_block_kernel(%arg0: i32, %arg1: memref<2x8x128xf32, #tpu.memory_space<vmem>>, %arg2: memref<1x128xf32, #tpu.memory_space<vmem>>, %arg3: memref<1x128xf32, #tpu.memory_space<vmem>>, %arg4: memref<1x128xf32, #tpu.memory_space<vmem>>, %arg5: memref<1x128xf32, #tpu.memory_space<vmem>>, %arg6: memref<128x8xbf16, #tpu.memory_space<vmem>>, %arg7: memref<128x1xf32, #tpu.memory_space<vmem>>, %arg8: memref<8x128xbf16, #tpu.memory_space<vmem>>, %arg9: memref<8x1xf32, #tpu.memory_space<vmem>>, %arg10: memref<128x128xbf16, #tpu.memory_space<vmem>>, %arg11: memref<1x128xf32, #tpu.memory_space<vmem>>, %arg12: memref<128x128xbf16, #tpu.memory_space<vmem>>, %arg13: memref<1x128xf32, #tpu.memory_space<vmem>>, %arg14: memref<2x8x128xf32, #tpu.memory_space<vmem>>) attributes {dimension_semantics = [#tpu.dimension_semantics<parallel>], iteration_bounds = array<i64: 2>, scalar_prefetch = 0 : i64, scratch_operands = 0 : i64, tpu.core_type = #tpu.core_type<tc>, window_params = [{transform_indices = @transform_0, window_bounds = array<i64: 2, 8, 128>}, {pipeline_mode = #tpu.pipeline_mode<synchronous>, transform_indices = @transform_1, window_bounds = array<i64: 1, 128>}, {pipeline_mode = #tpu.pipeline_mode<synchronous>, transform_indices = @transform_2, window_bounds = array<i64: 1, 128>}, {pipeline_mode = #tpu.pipeline_mode<synchronous>, transform_indices = @transform_3, window_bounds = array<i64: 1, 128>}, {pipeline_mode = #tpu.pipeline_mode<synchronous>, transform_indices = @transform_4, window_bounds = array<i64: 1, 128>}, {pipeline_mode = #tpu.pipeline_mode<synchronous>, transform_indices = @transform_5, window_bounds = array<i64: 128, 8>}, {pipeline_mode = #tpu.pipeline_mode<synchronous>, transform_indices = @transform_6, window_bounds = array<i64: 128, 1>}, {pipeline_mode = #tpu.pipeline_mode<synchronous>, transform_indices = @transform_7, window_bounds = array<i64: 8, 128>}, {pipeline_mode = #tpu.pipeline_mode<synchronous>, transform_indices = @transform_8, window_bounds = array<i64: 8, 1>}, {pipeline_mode = #tpu.pipeline_mode<synchronous>, transform_indices = @transform_9, window_bounds = array<i64: 128, 128>}, {pipeline_mode = #tpu.pipeline_mode<synchronous>, transform_indices = @transform_10, window_bounds = array<i64: 1, 128>}, {pipeline_mode = #tpu.pipeline_mode<synchronous>, transform_indices = @transform_11, window_bounds = array<i64: 128, 128>}, {pipeline_mode = #tpu.pipeline_mode<synchronous>, transform_indices = @transform_12, window_bounds = array<i64: 1, 128>}, {transform_indices = @transform_13, window_bounds = array<i64: 2, 8, 128>}]} {
    %c0 = arith.constant 0 : index
    %c0_0 = arith.constant 0 : index
    %c0_1 = arith.constant 0 : index
    %0 = vector.load %arg1[%c0, %c0_0, %c0_1] : memref<2x8x128xf32, #tpu.memory_space<vmem>>, vector<2x8x128xf32>
    %c0_2 = arith.constant 0 : index
    %c0_3 = arith.constant 0 : index
    %1 = vector.load %arg6[%c0_2, %c0_3] : memref<128x8xbf16, #tpu.memory_space<vmem>>, vector<128x8xbf16>
    %2 = vector.shape_cast %1 : vector<128x8xbf16> to vector<1x128x8xbf16>
    %3 = vector.broadcast %2 : vector<1x128x8xbf16> to vector<2x128x8xbf16>
    %c0_4 = arith.constant 0 : index
    %c0_5 = arith.constant 0 : index
    %4 = vector.load %arg8[%c0_4, %c0_5] : memref<8x128xbf16, #tpu.memory_space<vmem>>, vector<8x128xbf16>
    %5 = vector.shape_cast %4 : vector<8x128xbf16> to vector<1x8x128xbf16>
    %6 = vector.broadcast %5 : vector<1x8x128xbf16> to vector<2x8x128xbf16>
    %c0_6 = arith.constant 0 : index
    %c0_7 = arith.constant 0 : index
    %7 = vector.load %arg10[%c0_6, %c0_7] : memref<128x128xbf16, #tpu.memory_space<vmem>>, vector<128x128xbf16>
    %8 = vector.shape_cast %7 : vector<128x128xbf16> to vector<1x128x128xbf16>
    %9 = vector.broadcast %8 : vector<1x128x128xbf16> to vector<2x128x128xbf16>
    %c0_8 = arith.constant 0 : index
    %c0_9 = arith.constant 0 : index
    %10 = vector.load %arg12[%c0_8, %c0_9] : memref<128x128xbf16, #tpu.memory_space<vmem>>, vector<128x128xbf16>
    %11 = vector.shape_cast %10 : vector<128x128xbf16> to vector<1x128x128xbf16>
    %12 = vector.broadcast %11 : vector<1x128x128xbf16> to vector<2x128x128xbf16>
    %c0_10 = arith.constant 0 : index
    %c0_11 = arith.constant 0 : index
    %13 = vector.load %arg2[%c0_10, %c0_11] : memref<1x128xf32, #tpu.memory_space<vmem>>, vector<1x128xf32>
    %c0_12 = arith.constant 0 : index
    %c0_13 = arith.constant 0 : index
    %14 = vector.load %arg3[%c0_12, %c0_13] : memref<1x128xf32, #tpu.memory_space<vmem>>, vector<1x128xf32>
    %cst = arith.constant dense<0.000000e+00> : vector<2x8xf32>
    %15 = vector.multi_reduction <add>, %0, %cst [2] : vector<2x8x128xf32> to vector<2x8xf32>
    %16 = vector.shape_cast %15 : vector<2x8xf32> to vector<2x8x1xf32>
    %cst_14 = arith.constant 1.280000e+02 : f32
    %17 = vector.broadcast %cst_14 : f32 to vector<2x8x1xf32>
    %18 = arith.divf %16, %17 : vector<2x8x1xf32>
    %19 = vector.broadcast %18 : vector<2x8x1xf32> to vector<2x8x128xf32>
    %20 = arith.subf %0, %19 : vector<2x8x128xf32>
    %21 = arith.mulf %20, %20 : vector<2x8x128xf32>
    %cst_15 = arith.constant dense<0.000000e+00> : vector<2x8xf32>
    %22 = vector.multi_reduction <add>, %21, %cst_15 [2] : vector<2x8x128xf32> to vector<2x8xf32>
    %23 = vector.shape_cast %22 : vector<2x8xf32> to vector<2x8x1xf32>
    %cst_16 = arith.constant 1.280000e+02 : f32
    %24 = vector.broadcast %cst_16 : f32 to vector<2x8x1xf32>
    %25 = arith.divf %23, %24 : vector<2x8x1xf32>
    %cst_17 = arith.constant 9.99999974E-6 : f32
    %26 = vector.broadcast %cst_17 : f32 to vector<2x8x1xf32>
    %27 = arith.addf %25, %26 : vector<2x8x1xf32>
    %28 = math.rsqrt %27 : vector<2x8x1xf32>
    %29 = vector.broadcast %28 : vector<2x8x1xf32> to vector<2x8x128xf32>
    %30 = arith.mulf %20, %29 : vector<2x8x128xf32>
    %31 = vector.shape_cast %13 : vector<1x128xf32> to vector<1x1x128xf32>
    %32 = vector.broadcast %31 : vector<1x1x128xf32> to vector<2x8x128xf32>
    %33 = arith.mulf %30, %32 : vector<2x8x128xf32>
    %34 = vector.shape_cast %14 : vector<1x128xf32> to vector<1x1x128xf32>
    %35 = vector.broadcast %34 : vector<1x1x128xf32> to vector<2x8x128xf32>
    %36 = arith.addf %33, %35 : vector<2x8x128xf32>
    %37 = arith.truncf %36 : vector<2x8x128xf32> to vector<2x8x128xbf16>
    %cst_18 = arith.constant dense<0.000000e+00> : vector<2x128x128xf32>
    %38 = tpu.matmul %3, %37, %cst_18 {dimension_numbers = #tpu.dot_dimension_numbers<[2], [1], [1], [2], [0, 0, 0, 1, 1, 2], [0], [0]>} : vector<2x128x8xbf16>, vector<2x8x128xbf16>, vector<2x128x128xf32> -> vector<2x128x128xf32>
    %c0_19 = arith.constant 0 : index
    %c0_20 = arith.constant 0 : index
    %39 = vector.load %arg7[%c0_19, %c0_20] : memref<128x1xf32, #tpu.memory_space<vmem>>, vector<128x1xf32>
    %40 = vector.shape_cast %39 : vector<128x1xf32> to vector<1x128x1xf32>
    %41 = vector.broadcast %40 : vector<1x128x1xf32> to vector<2x128x128xf32>
    %42 = arith.addf %38, %41 : vector<2x128x128xf32>
    %cst_21 = arith.constant 5.000000e-01 : f32
    %43 = vector.broadcast %cst_21 : f32 to vector<2x128x128xf32>
    %44 = arith.mulf %43, %42 : vector<2x128x128xf32>
    %cst_22 = arith.constant 0.707106769 : f32
    %45 = vector.broadcast %cst_22 : f32 to vector<2x128x128xf32>
    %46 = arith.mulf %42, %45 : vector<2x128x128xf32>
    %47 = math.absf %46 : vector<2x128x128xf32>
    %cst_23 = arith.constant 0.327591091 : f32
    %48 = vector.broadcast %cst_23 : f32 to vector<2x128x128xf32>
    %49 = arith.mulf %48, %47 : vector<2x128x128xf32>
    %cst_24 = arith.constant 1.000000e+00 : f32
    %50 = vector.broadcast %cst_24 : f32 to vector<2x128x128xf32>
    %51 = arith.addf %50, %49 : vector<2x128x128xf32>
    %cst_25 = arith.constant 1.000000e+00 : f32
    %52 = vector.broadcast %cst_25 : f32 to vector<2x128x128xf32>
    %53 = arith.divf %52, %51 : vector<2x128x128xf32>
    %cst_26 = arith.constant 1.06140542 : f32
    %54 = vector.broadcast %cst_26 : f32 to vector<2x128x128xf32>
    %55 = arith.mulf %54, %53 : vector<2x128x128xf32>
    %cst_27 = arith.constant -1.45315206 : f32
    %56 = vector.broadcast %cst_27 : f32 to vector<2x128x128xf32>
    %57 = arith.addf %55, %56 : vector<2x128x128xf32>
    %58 = arith.mulf %57, %53 : vector<2x128x128xf32>
    %cst_28 = arith.constant 1.42141378 : f32
    %59 = vector.broadcast %cst_28 : f32 to vector<2x128x128xf32>
    %60 = arith.addf %58, %59 : vector<2x128x128xf32>
    %61 = arith.mulf %60, %53 : vector<2x128x128xf32>
    %cst_29 = arith.constant -0.284496725 : f32
    %62 = vector.broadcast %cst_29 : f32 to vector<2x128x128xf32>
    %63 = arith.addf %61, %62 : vector<2x128x128xf32>
    %64 = arith.mulf %63, %53 : vector<2x128x128xf32>
    %cst_30 = arith.constant 0.254829586 : f32
    %65 = vector.broadcast %cst_30 : f32 to vector<2x128x128xf32>
    %66 = arith.addf %64, %65 : vector<2x128x128xf32>
    %67 = arith.mulf %66, %53 : vector<2x128x128xf32>
    %cst_31 = arith.constant 0.000000e+00 : f32
    %68 = vector.broadcast %cst_31 : f32 to vector<2x128x128xf32>
    %69 = arith.subf %68, %47 : vector<2x128x128xf32>
    %70 = arith.mulf %69, %47 : vector<2x128x128xf32>
    %71 = math.exp %70 : vector<2x128x128xf32>
    %72 = arith.mulf %67, %71 : vector<2x128x128xf32>
    %cst_32 = arith.constant 1.000000e+00 : f32
    %73 = vector.broadcast %cst_32 : f32 to vector<2x128x128xf32>
    %74 = arith.subf %73, %72 : vector<2x128x128xf32>
    %cst_33 = arith.constant 0.000000e+00 : f32
    %75 = vector.broadcast %cst_33 : f32 to vector<2x128x128xf32>
    %76 = arith.cmpf olt, %46, %75 : vector<2x128x128xf32>
    %cst_34 = arith.constant 0.000000e+00 : f32
    %77 = vector.broadcast %cst_34 : f32 to vector<2x128x128xf32>
    %78 = arith.subf %77, %74 : vector<2x128x128xf32>
    %79 = arith.select %76, %78, %74 : vector<2x128x128xi1>, vector<2x128x128xf32>
    %cst_35 = arith.constant 1.000000e+00 : f32
    %80 = vector.broadcast %cst_35 : f32 to vector<2x128x128xf32>
    %81 = arith.addf %80, %79 : vector<2x128x128xf32>
    %82 = arith.mulf %44, %81 : vector<2x128x128xf32>
    %83 = arith.truncf %82 : vector<2x128x128xf32> to vector<2x128x128xbf16>
    %cst_36 = arith.constant dense<0.000000e+00> : vector<2x8x128xf32>
    %84 = tpu.matmul %6, %83, %cst_36 {dimension_numbers = #tpu.dot_dimension_numbers<[2], [1], [1], [2], [0, 0, 0, 1, 1, 2], [0], [0]>} : vector<2x8x128xbf16>, vector<2x128x128xbf16>, vector<2x8x128xf32> -> vector<2x8x128xf32>
    %c0_37 = arith.constant 0 : index
    %c0_38 = arith.constant 0 : index
    %85 = vector.load %arg9[%c0_37, %c0_38] : memref<8x1xf32, #tpu.memory_space<vmem>>, vector<8x1xf32>
    %86 = vector.shape_cast %85 : vector<8x1xf32> to vector<1x8x1xf32>
    %87 = vector.broadcast %86 : vector<1x8x1xf32> to vector<2x8x128xf32>
    %88 = arith.addf %84, %87 : vector<2x8x128xf32>
    %89 = arith.addf %88, %0 : vector<2x8x128xf32>
    %c0_39 = arith.constant 0 : index
    %c0_40 = arith.constant 0 : index
    %90 = vector.load %arg4[%c0_39, %c0_40] : memref<1x128xf32, #tpu.memory_space<vmem>>, vector<1x128xf32>
    %c0_41 = arith.constant 0 : index
    %c0_42 = arith.constant 0 : index
    %91 = vector.load %arg5[%c0_41, %c0_42] : memref<1x128xf32, #tpu.memory_space<vmem>>, vector<1x128xf32>
    %cst_43 = arith.constant dense<0.000000e+00> : vector<2x8xf32>
    %92 = vector.multi_reduction <add>, %89, %cst_43 [2] : vector<2x8x128xf32> to vector<2x8xf32>
    %93 = vector.shape_cast %92 : vector<2x8xf32> to vector<2x8x1xf32>
    %cst_44 = arith.constant 1.280000e+02 : f32
    %94 = vector.broadcast %cst_44 : f32 to vector<2x8x1xf32>
    %95 = arith.divf %93, %94 : vector<2x8x1xf32>
    %96 = vector.broadcast %95 : vector<2x8x1xf32> to vector<2x8x128xf32>
    %97 = arith.subf %89, %96 : vector<2x8x128xf32>
    %98 = arith.mulf %97, %97 : vector<2x8x128xf32>
    %cst_45 = arith.constant dense<0.000000e+00> : vector<2x8xf32>
    %99 = vector.multi_reduction <add>, %98, %cst_45 [2] : vector<2x8x128xf32> to vector<2x8xf32>
    %100 = vector.shape_cast %99 : vector<2x8xf32> to vector<2x8x1xf32>
    %cst_46 = arith.constant 1.280000e+02 : f32
    %101 = vector.broadcast %cst_46 : f32 to vector<2x8x1xf32>
    %102 = arith.divf %100, %101 : vector<2x8x1xf32>
    %cst_47 = arith.constant 9.99999974E-6 : f32
    %103 = vector.broadcast %cst_47 : f32 to vector<2x8x1xf32>
    %104 = arith.addf %102, %103 : vector<2x8x1xf32>
    %105 = math.rsqrt %104 : vector<2x8x1xf32>
    %106 = vector.broadcast %105 : vector<2x8x1xf32> to vector<2x8x128xf32>
    %107 = arith.mulf %97, %106 : vector<2x8x128xf32>
    %108 = vector.shape_cast %90 : vector<1x128xf32> to vector<1x1x128xf32>
    %109 = vector.broadcast %108 : vector<1x1x128xf32> to vector<2x8x128xf32>
    %110 = arith.mulf %107, %109 : vector<2x8x128xf32>
    %111 = vector.shape_cast %91 : vector<1x128xf32> to vector<1x1x128xf32>
    %112 = vector.broadcast %111 : vector<1x1x128xf32> to vector<2x8x128xf32>
    %113 = arith.addf %110, %112 : vector<2x8x128xf32>
    %114 = arith.truncf %113 : vector<2x8x128xf32> to vector<2x8x128xbf16>
    %cst_48 = arith.constant dense<0.000000e+00> : vector<2x8x128xf32>
    %115 = tpu.matmul %114, %9, %cst_48 {dimension_numbers = #tpu.dot_dimension_numbers<[2], [1], [1], [2], [0, 0, 0, 1, 1, 2], [0], [0]>} : vector<2x8x128xbf16>, vector<2x128x128xbf16>, vector<2x8x128xf32> -> vector<2x8x128xf32>
    %c0_49 = arith.constant 0 : index
    %c0_50 = arith.constant 0 : index
    %116 = vector.load %arg11[%c0_49, %c0_50] : memref<1x128xf32, #tpu.memory_space<vmem>>, vector<1x128xf32>
    %117 = vector.shape_cast %116 : vector<1x128xf32> to vector<1x1x128xf32>
    %118 = vector.broadcast %117 : vector<1x1x128xf32> to vector<2x8x128xf32>
    %119 = arith.addf %115, %118 : vector<2x8x128xf32>
    %cst_51 = arith.constant 5.000000e-01 : f32
    %120 = vector.broadcast %cst_51 : f32 to vector<2x8x128xf32>
    %121 = arith.mulf %120, %119 : vector<2x8x128xf32>
    %cst_52 = arith.constant 0.707106769 : f32
    %122 = vector.broadcast %cst_52 : f32 to vector<2x8x128xf32>
    %123 = arith.mulf %119, %122 : vector<2x8x128xf32>
    %124 = math.absf %123 : vector<2x8x128xf32>
    %cst_53 = arith.constant 0.327591091 : f32
    %125 = vector.broadcast %cst_53 : f32 to vector<2x8x128xf32>
    %126 = arith.mulf %125, %124 : vector<2x8x128xf32>
    %cst_54 = arith.constant 1.000000e+00 : f32
    %127 = vector.broadcast %cst_54 : f32 to vector<2x8x128xf32>
    %128 = arith.addf %127, %126 : vector<2x8x128xf32>
    %cst_55 = arith.constant 1.000000e+00 : f32
    %129 = vector.broadcast %cst_55 : f32 to vector<2x8x128xf32>
    %130 = arith.divf %129, %128 : vector<2x8x128xf32>
    %cst_56 = arith.constant 1.06140542 : f32
    %131 = vector.broadcast %cst_56 : f32 to vector<2x8x128xf32>
    %132 = arith.mulf %131, %130 : vector<2x8x128xf32>
    %cst_57 = arith.constant -1.45315206 : f32
    %133 = vector.broadcast %cst_57 : f32 to vector<2x8x128xf32>
    %134 = arith.addf %132, %133 : vector<2x8x128xf32>
    %135 = arith.mulf %134, %130 : vector<2x8x128xf32>
    %cst_58 = arith.constant 1.42141378 : f32
    %136 = vector.broadcast %cst_58 : f32 to vector<2x8x128xf32>
    %137 = arith.addf %135, %136 : vector<2x8x128xf32>
    %138 = arith.mulf %137, %130 : vector<2x8x128xf32>
    %cst_59 = arith.constant -0.284496725 : f32
    %139 = vector.broadcast %cst_59 : f32 to vector<2x8x128xf32>
    %140 = arith.addf %138, %139 : vector<2x8x128xf32>
    %141 = arith.mulf %140, %130 : vector<2x8x128xf32>
    %cst_60 = arith.constant 0.254829586 : f32
    %142 = vector.broadcast %cst_60 : f32 to vector<2x8x128xf32>
    %143 = arith.addf %141, %142 : vector<2x8x128xf32>
    %144 = arith.mulf %143, %130 : vector<2x8x128xf32>
    %cst_61 = arith.constant 0.000000e+00 : f32
    %145 = vector.broadcast %cst_61 : f32 to vector<2x8x128xf32>
    %146 = arith.subf %145, %124 : vector<2x8x128xf32>
    %147 = arith.mulf %146, %124 : vector<2x8x128xf32>
    %148 = math.exp %147 : vector<2x8x128xf32>
    %149 = arith.mulf %144, %148 : vector<2x8x128xf32>
    %cst_62 = arith.constant 1.000000e+00 : f32
    %150 = vector.broadcast %cst_62 : f32 to vector<2x8x128xf32>
    %151 = arith.subf %150, %149 : vector<2x8x128xf32>
    %cst_63 = arith.constant 0.000000e+00 : f32
    %152 = vector.broadcast %cst_63 : f32 to vector<2x8x128xf32>
    %153 = arith.cmpf olt, %123, %152 : vector<2x8x128xf32>
    %cst_64 = arith.constant 0.000000e+00 : f32
    %154 = vector.broadcast %cst_64 : f32 to vector<2x8x128xf32>
    %155 = arith.subf %154, %151 : vector<2x8x128xf32>
    %156 = arith.select %153, %155, %151 : vector<2x8x128xi1>, vector<2x8x128xf32>
    %cst_65 = arith.constant 1.000000e+00 : f32
    %157 = vector.broadcast %cst_65 : f32 to vector<2x8x128xf32>
    %158 = arith.addf %157, %156 : vector<2x8x128xf32>
    %159 = arith.mulf %121, %158 : vector<2x8x128xf32>
    %160 = arith.truncf %159 : vector<2x8x128xf32> to vector<2x8x128xbf16>
    %cst_66 = arith.constant dense<0.000000e+00> : vector<2x8x128xf32>
    %161 = tpu.matmul %160, %12, %cst_66 {dimension_numbers = #tpu.dot_dimension_numbers<[2], [1], [1], [2], [0, 0, 0, 1, 1, 2], [0], [0]>} : vector<2x8x128xbf16>, vector<2x128x128xbf16>, vector<2x8x128xf32> -> vector<2x8x128xf32>
    %c0_67 = arith.constant 0 : index
    %c0_68 = arith.constant 0 : index
    %162 = vector.load %arg13[%c0_67, %c0_68] : memref<1x128xf32, #tpu.memory_space<vmem>>, vector<1x128xf32>
    %163 = vector.shape_cast %162 : vector<1x128xf32> to vector<1x1x128xf32>
    %164 = vector.broadcast %163 : vector<1x1x128xf32> to vector<2x8x128xf32>
    %165 = arith.addf %161, %164 : vector<2x8x128xf32>
    %166 = arith.addf %165, %89 : vector<2x8x128xf32>
    %c0_69 = arith.constant 0 : index
    %c0_70 = arith.constant 0 : index
    %c0_71 = arith.constant 0 : index
    %167 = vector.load %arg14[%c0_69, %c0_70, %c0_71] : memref<2x8x128xf32, #tpu.memory_space<vmem>>, vector<2x8x128xf32>
    tpu.vector_store %arg14[%c0_69, %c0_70, %c0_71], %166 {strides = array<i32>} : memref<2x8x128xf32, #tpu.memory_space<vmem>>, vector<2x8x128xf32>,
    return
  }
  func.func @transform_0(%arg0: i32) -> (i32, i32, i32) {
    %c0_i32 = arith.constant 0 : i32
    %c0_i32_0 = arith.constant 0 : i32
    %c0_i32_1 = arith.constant 0 : i32
    return %arg0, %c0_i32, %c0_i32_0 : i32, i32, i32
  }
  func.func @transform_1(%arg0: i32) -> (i32, i32) {
    %c0_i32 = arith.constant 0 : i32
    %c0_i32_0 = arith.constant 0 : i32
    %c0_i32_1 = arith.constant 0 : i32
    return %c0_i32, %c0_i32_0 : i32, i32
  }
  func.func @transform_2(%arg0: i32) -> (i32, i32) {
    %c0_i32 = arith.constant 0 : i32
    %c0_i32_0 = arith.constant 0 : i32
    %c0_i32_1 = arith.constant 0 : i32
    return %c0_i32, %c0_i32_0 : i32, i32
  }
  func.func @transform_3(%arg0: i32) -> (i32, i32) {
    %c0_i32 = arith.constant 0 : i32
    %c0_i32_0 = arith.constant 0 : i32
    %c0_i32_1 = arith.constant 0 : i32
    return %c0_i32, %c0_i32_0 : i32, i32
  }
  func.func @transform_4(%arg0: i32) -> (i32, i32) {
    %c0_i32 = arith.constant 0 : i32
    %c0_i32_0 = arith.constant 0 : i32
    %c0_i32_1 = arith.constant 0 : i32
    return %c0_i32, %c0_i32_0 : i32, i32
  }
  func.func @transform_5(%arg0: i32) -> (i32, i32) {
    %c0_i32 = arith.constant 0 : i32
    %c0_i32_0 = arith.constant 0 : i32
    %c0_i32_1 = arith.constant 0 : i32
    return %c0_i32, %c0_i32_0 : i32, i32
  }
  func.func @transform_6(%arg0: i32) -> (i32, i32) {
    %c0_i32 = arith.constant 0 : i32
    %c0_i32_0 = arith.constant 0 : i32
    %c0_i32_1 = arith.constant 0 : i32
    return %c0_i32, %c0_i32_0 : i32, i32
  }
  func.func @transform_7(%arg0: i32) -> (i32, i32) {
    %c0_i32 = arith.constant 0 : i32
    %c0_i32_0 = arith.constant 0 : i32
    %c0_i32_1 = arith.constant 0 : i32
    return %c0_i32, %c0_i32_0 : i32, i32
  }
  func.func @transform_8(%arg0: i32) -> (i32, i32) {
    %c0_i32 = arith.constant 0 : i32
    %c0_i32_0 = arith.constant 0 : i32
    %c0_i32_1 = arith.constant 0 : i32
    return %c0_i32, %c0_i32_0 : i32, i32
  }
  func.func @transform_9(%arg0: i32) -> (i32, i32) {
    %c0_i32 = arith.constant 0 : i32
    %c0_i32_0 = arith.constant 0 : i32
    %c0_i32_1 = arith.constant 0 : i32
    return %c0_i32, %c0_i32_0 : i32, i32
  }
  func.func @transform_10(%arg0: i32) -> (i32, i32) {
    %c0_i32 = arith.constant 0 : i32
    %c0_i32_0 = arith.constant 0 : i32
    %c0_i32_1 = arith.constant 0 : i32
    return %c0_i32, %c0_i32_0 : i32, i32
  }
  func.func @transform_11(%arg0: i32) -> (i32, i32) {
    %c0_i32 = arith.constant 0 : i32
    %c0_i32_0 = arith.constant 0 : i32
    %c0_i32_1 = arith.constant 0 : i32
    return %c0_i32, %c0_i32_0 : i32, i32
  }
  func.func @transform_12(%arg0: i32) -> (i32, i32) {
    %c0_i32 = arith.constant 0 : i32
    %c0_i32_0 = arith.constant 0 : i32
    %c0_i32_1 = arith.constant 0 : i32
    return %c0_i32, %c0_i32_0 : i32, i32
  }
  func.func @transform_13(%arg0: i32) -> (i32, i32, i32) {
    %c0_i32 = arith.constant 0 : i32
    %c0_i32_0 = arith.constant 0 : i32
    %c0_i32_1 = arith.constant 0 : i32
    return %arg0, %c0_i32, %c0_i32_0 : i32, i32, i32
  }
}

</mosaic_0001>

<bundles_post_ra>
// kernel: tpu_custom_call.1
= control target key start
LH: loop header
LB: loop body
LE: loop exit
PB: predicated region body
PF: predicated region fallthrough
CT: control target
= control target key end

     0   :  { %s4168_s0 = inlined_call_operand.vmem [shape: f32[4,8,128], index: 0, kind: input, shape index: {}]   ;;  %s4169_s1 = inlined_call_operand.vmem [shape: f32[1,128], index: 1, kind: input, shape index: {}]   ;;  %s4170_s2 = inlined_call_operand.vmem [shape: f32[1,128], index: 2, kind: input, shape index: {}]   ;;  %s4171_s3 = inlined_call_operand.vmem [shape: f32[1,128], index: 3, kind: input, shape index: {}]   ;;  %s4172_s4 = inlined_call_operand.vmem [shape: f32[1,128], index: 4, kind: input, shape index: {}]   ;;  %s4173_s5 = inlined_call_operand.vmem [shape: bf16[128,8], index: 5, kind: input, shape index: {}]   ;;  %s4174_s6 = inlined_call_operand.vmem [shape: f32[128,1], index: 6, kind: input, shape index: {}]   ;;  %s4175_s7 = inlined_call_operand.vmem [shape: bf16[8,128], index: 7, kind: input, shape index: {}]   ;;  %s4176_s8 = inlined_call_operand.vmem [shape: f32[8,1], index: 8, kind: input, shape index: {}]   ;;  %s4177_s9 = inlined_call_operand.vmem [shape: bf16[128,128], index: 9, kind: input, shape index: {}]   ;;  %s4178_s10 = inlined_call_operand.vmem [shape: f32[1,128], index: 10, kind: input, shape index: {}]   ;;  %s4179_s11 = inlined_call_operand.vmem [shape: bf16[128,128], index: 11, kind: input, shape index: {}]   ;;  %s4180_s12 = inlined_call_operand.vmem [shape: f32[1,128], index: 12, kind: input, shape index: {}]   ;;  %s4181_s13 = inlined_call_operand.hbm [shape: f32[4,8,128], index: 13, kind: output, shape index: {}]  }
   0x1   :  { %4192 = sst [smem:[#allocation21_spill]] %s4168_s0 }
   0x2   :  { %18 = vsyncpa [#allocation3], 0 }
   0x3   :  { %20 = vsyncpa [#allocation3 + $0x1], 0  ;;  %s2960_s25 = smov 0   ;;  %s2962_s26 = smov 0  }
   0x4   :  { %s2964_s27 = smov 0   ;;  %s2966_s28 = smov 0  }
   0x5 LB: > { %4193 = sst [smem:[#allocation5_spill]] %s2878_s27  ;;  %s2981_s29 = sadd.s32 4294967295, %s2882_s28   ;;  %s2882_s28 = sphi %s2966_s28, %s4249_s28   ;;  %s2878_s27 = sphi %s2964_s27, %s4246_s27   ;;  %s2874_s26 = sphi %s2962_s26, %s4248_s26   ;;  %s2870_s25 = sphi %s2960_s25, %s4247_s25  }
   0x6   : > { %s2315_s30 = sadd.s32 4294967294, %s2882_s28   ;;  %s2985_s14 = sadd.s32 1, %s2882_s28  }
   0x7   : > { %s311_s15 = sadd.s32 1, %s2878_s27  ;;  %s308_s16 = ssub.s32 %s2882_s28, %s2985_s14 }
   0x8   : > { %p321_p0 = scmp.ne.s32.totalorder %s2878_s27, %s2874_s26  ;;  %p309_p1 = scmp.eq.s32.totalorder %s308_s16, 0 }
   0x9   : > { %p322_p2 = scmp.eq.s32.totalorder %s2981_s29, 1  ;;  %p327_p3 = scmp.ne.s32.totalorder %s2874_s26, %s2870_s25 }
   0xa   : > { %p328_p4 = scmp.eq.s32.totalorder %s2315_s30, 1  ;;  %p2318_p7 = scmp.ge.s32.totalorder %s2882_s28, 1 }
   0xb   : > { %s2996_s17 = scalar_select %p309_p1, %s2878_s27, %s311_s15  }
   0xc   : > { %p2998_p5 = por %p322_p2, %p321_p0  ;;  %p3002_p6 = por %p328_p4, %p327_p3 }
   0xd   : > { %4194 = sst [smem:[#allocation6_spill]] %s2996_s17  ;;  %p391_p8 = scmp.lt.s32.totalorder %s2882_s28, 3 }
   0xf   : > { %p392_p9 = pnand %p2318_p7, %p391_p8 }
  0x11   : > { %395 = sbr.rel (%p392_p9) target bundleno = 1832 (0x728), region = 72 }
  0x18   : > { %s2320_s20 = sshll.u32 %s2981_s29, 1  ;;  %s4197_s0 = sld [smem:[#allocation21_spill]]  ;;  %v2650_v10 = vld [vmem:[%s4173_s5] sm:$0xff]   ;;  %vm673_vm0 = vcmask 64512   ;;  %v538_v11 = vld [vmem:[%s4174_s6 + $0x8] sm:$0xff]  ;;  %v2884_v12 = vmov 0  }
  0x19   : > { %p436_p10 = scmp.lt.s32.totalorder %s2320_s20, 3  ;;  %2448 = vmatprep.mubr.msk.bf16.mxu0 %vm673_vm0, %v2650_v10  ;;  %2466 = vmatprep.mubr.msk.bf16.mxu1 %vm673_vm0, %v2650_v10  ;;  %v539_v13 = vld [vmem:[%s4174_s6 + $0x10] sm:$0xff]  ;;  %v537_v14 = vld [vmem:[%s4174_s6] sm:$0xff]  ;;  %v546_v15 = vld [vmem:[%s4174_s6 + $0x48] sm:$0xff]  ;;  %vm698_vm1 = vcmask 1043456   ;;  %s432_s16 = sand.u32 1, %s2874_s26  }
  0x1a   : > { %2649 = vset.pattern.permute.xlu1 %v2884_v12  ;;  %2648 = vset.pattern.permute.xlu0 %v2884_v12  ;;  %v540_v16 = vld [vmem:[%s4174_s6 + $0x18] sm:$0xff]  ;;  %v541_v18 = vld [vmem:[%s4174_s6 + $0x20] sm:$0xff]  ;;  %v550_v19 = vld [vmem:[%s4174_s6 + $0x68] sm:$0xff]  ;;  %s2319_s17 = sshll.u32 %s432_s16, 4  ;;  %s2373_s23 = sshll.u32 %s2981_s29, 8 }
  0x1b   : > { %s4251_s20 = smov (!%p436_p10, %s2320_s20), 3  ;;  %v548_v17 = vld [vmem:[%s4174_s6 + $0x58] sm:$0xff]  ;;  %v542_v20 = vld [vmem:[%s4174_s6 + $0x28] sm:$0xff]  ;;  %v543_v22 = vld [vmem:[%s4174_s6 + $0x30] sm:$0xff]  ;;  %s4125_s15 = scalar_lea.hbm %s4181_s13, %s2373_s23 }
  0x1c   : > { %s2321_s21 = sshll.u32 %s4251_s20, 3  ;;  %v552_v21 = vld [vmem:[%s4174_s6 + $0x78] sm:$0xff]  ;;  %v545_v24 = vld [vmem:[%s4174_s6 + $0x40] sm:$0xff]  ;;  %v547_v25 = vld [vmem:[%s4174_s6 + $0x50] sm:$0xff]  ;;  %s2887_s20 = smov [#allocation2]  }
  0x1d   : > { %v544_v23 = vld [vmem:[%s4174_s6 + $0x38] sm:$0xff]  ;;  %v549_v26 = vld [vmem:[%s4174_s6 + $0x60] sm:$0xff]  ;;  %v551_v27 = vld [vmem:[%s4174_s6 + $0x70] sm:$0xff]  ;;  %s2824_s27 = sshll.u32 %s2887_s20, 4  ;;  %s2825_s27 = int_to_ptr.vmem [resolvable:$false] %s2824_s27 }
  0x1e   : > { %s3012_s24 = scalar_lea.vmem %s4197_s0, %s2321_s21  ;;  %v1779_v28 = vld [vmem:[%s4176_s8] sm:$0xff]  ;;  %v2651_v46 = vld [vmem:[%s4173_s5 + $0x8] sm:$0xff]   ;;  %v2652_v48 = vld [vmem:[%s4173_s5 + $0x10] sm:$0xff]   ;;  %s434_s21 = scalar_lea.vmem [#allocation2], %s2319_s17 }
  0x1f   : > { %v443_v0 = vld [vmem:[%s3012_s24] sm:$0xff]  ;;  %v444_v1 = vld [vmem:[%s3012_s24 + $0x8] sm:$0xff]  ;;  %v2653_v51 = vld [vmem:[%s4173_s5 + $0x18] sm:$0xff]   ;;  %s2253_s22 = sshll.u32 %s434_s21, 4  ;;  %s2826_s17 = scalar_lea.vmem %s2825_s27, 512  ;;  %s4119_s22 = int_to_ptr.vmem [resolvable:$true] %s2253_s22 }
  0x20   : > { %496 = vadd.xlane.f32.xlu0 %v443_v0  ;;  %v2322_v36 = vld [vmem:[%s4169_s1] ss:$0 sm:$0xff]  ;;  %v2655_v53 = vld [vmem:[%s4173_s5 + $0x28] sm:$0xff]   ;;  %v2656_v54 = vld [vmem:[%s4173_s5 + $0x30] sm:$0xff]   ;;  %s2820_s29 = scalar_lea.vmem %s4119_s22, 256  ;;  %p2827_p0 = scmp.lt.s32.totalorder %s4119_s22, %s2825_s27 }
  0x21   : > { %v2323_v38 = vld [vmem:[%s4170_s2] ss:$0 sm:$0xff]  ;;  %v2657_v55 = vld [vmem:[%s4173_s5 + $0x38] sm:$0xff]   ;;  %p2821_p11 = scmp.ne.s32.totalorder %s4119_s22, %s2820_s29  ;;  %p2828_p1 = scmp.lt.s32.totalorder %s2826_s17, %s2820_s29 }
  0x22   : > { %v2654_v52 = vld [vmem:[%s4173_s5 + $0x20] sm:$0xff]  }
  0x23   : > { %p2822_p12 = pnand %p2821_p11, %p2998_p5  ;;  %p2829_p2 = por %p2828_p1, %p2827_p0 }
  0x24   : > { %498 = vadd.xlane.f32.xlu0 %v444_v1 }
  0x25   : > { %p2823_p13 = pneg %p2822_p12 }
  0x27   : > { %p2830_p3 = pnand %p2829_p2, %p2823_p13 }
  0x3a   : > { %555 = vperm.xlu0 %2648, %v537_v14  }
  0x3e   : > { %600 = vperm.xlu0 %2648, %v546_v15  }
  0x42   : > { %610 = vperm.xlu0 %2648, %v548_v17  }
  0x46   : > { %620 = vperm.xlu0 %2648, %v550_v19  }
  0x4a   : > { %630 = vperm.xlu0 %2648, %v552_v21  }
  0xad   : > { %v497_v2 = vpop.xlane.xlu0 %496 }
  0xae   : > { %v501_v3 = vmul.f32 0.0078125, %v497_v2 }
  0xb0   : > { %v503_v4 = vsub.f32 %v443_v0, %v501_v3 }
  0xb1   : > { %v499_v5 = vpop.xlane.xlu0 %498 }
  0xb2   : > { %v502_v6 = vmul.f32 0.0078125, %v499_v5  ;;  %v505_v7 = vmul.f32 %v503_v4, %v503_v4 }
  0xb4   : > { %v504_v8 = vsub.f32 %v444_v1, %v502_v6  ;;  %507 = vadd.xlane.f32.xlu1 %v505_v7 }
  0xb6   : > { %v506_v9 = vmul.f32 %v504_v8, %v504_v8 }
  0xb8   : > { %509 = vadd.xlane.f32.xlu1 %v506_v9 }
  0xb9   : > { %v556_v59 = vpop.permute.xlu0 %555 }
  0xc9   : > { %560 = vperm.xlu1 %2649, %v538_v11  }
  0xcd   : > { %565 = vperm.xlu1 %2649, %v539_v13  }
  0xd1   : > { %570 = vperm.xlu1 %2649, %v540_v16  }
  0xd5   : > { %575 = vperm.xlu1 %2649, %v541_v18  }
  0xd9   : > { %580 = vperm.xlu1 %2649, %v542_v20  }
  0xdd   : > { %585 = vperm.xlu1 %2649, %v543_v22  }
  0xe1   : > { %590 = vperm.xlu1 %2649, %v544_v23  }
  0xe5   : > { %595 = vperm.xlu1 %2649, %v545_v24  }
  0xe9   : > { %605 = vperm.xlu1 %2649, %v547_v25  }
  0xed   : > { %615 = vperm.xlu1 %2649, %v549_v26  }
  0xf1   : > { %625 = vperm.xlu1 %2649, %v551_v27  }
  0xf5   : > { %1782 = vperm.xlu1 %2649, %v1779_v28  }
 0x141   : > { %v508_v29 = vpop.xlane.xlu1 %507 }
 0x142   : > { %v511_v30 = vmul.f32 0.0078125, %v508_v29 }
 0x144   : > { %v513_v31 = vadd.f32 1e-05, %v511_v30 }
 0x145   : > { %v510_v32 = vpop.xlane.xlu1 %509 }
 0x146   : > { %2674 = vrsqrt.f32 %v513_v31  ;;  %v512_v33 = vmul.f32 0.0078125, %v510_v32 }
 0x148   : > { %v514_v34 = vadd.f32 1e-05, %v512_v33 }
 0x149   : > { %v561_v56 = vpop.permute.xlu1 %560 }
 0x14a   : > { %2676 = vrsqrt.f32 %v514_v34 }
 0x14d   : > { %v566_v57 = vpop.permute.xlu1 %565 }
 0x150   : > { %v2675_v35 = vpop.eup %2674 }
 0x151   : > { %v517_v37 = vmul.f32 %v2675_v35, %v503_v4  ;;  %v571_v62 = vpop.permute.xlu1 %570 }
 0x153   : > { %v525_v39 = vmul.f32 %v2322_v36, %v517_v37 }
 0x154   : > { %v2677_v40 = vpop.eup %2676 }
 0x155   : > { %v533_v41 = vadd.f32 %v2323_v38, %v525_v39  ;;  %v518_v42 = vmul.f32 %v2677_v40, %v504_v8 }
 0x157   : > { %v535_v43 = vpack.c.bf16 %v533_v41, %v533_v41  ;;  %v526_v44 = vmul.f32 %v2322_v36, %v518_v42  ;;  %v3153_v41 = vpop.permute.xlu1 %575 }
 0x159   : > { %2602 = vmatprep.subr.msk.bf16.mxu0 %vm698_vm1, %v535_v43  ;;  %v700_v45 = vsel %vm698_vm1, %v535_v43, 0  ;;  %v534_v47 = vadd.f32 %v2323_v38, %v526_v44 }
 0x15a   : > { %2447 = vmatpush3.bf16.msra.mxu0 %v700_v45 }
 0x15b   : > { %v536_v49 = vpack.c.bf16 %v534_v47, %v534_v47 }
 0x15d   : > { %2449 = vmatmul.mubr.msk.bf16.vlgmr.msra.gmra.mrb[0].mxu0 %vm673_vm0, %v2651_v46  ;;  %2603 = vmatprep.subr.msk.bf16.mxu1 %vm698_vm1, %v536_v49  ;;  %v800_v50 = vsel %vm698_vm1, %v536_v49, 0 }
 0x15e   : > { %2465 = vmatpush3.bf16.msra.mxu1 %v800_v50  ;;  %2452 = vmatprep.mubr.msk.bf16.mxu0 %vm673_vm0, %v2652_v48 }
 0x161   : > { %2467 = vmatmul.mubr.msk.bf16.vlgmr.msra.gmra.mrb[0].mxu1 %vm673_vm0, %v2651_v46 }
 0x162   : > { %2470 = vmatprep.mubr.msk.bf16.mxu1 %vm673_vm0, %v2652_v48 }
 0x165   : > { %2453 = vmatmul.mubr.msk.bf16.gmra.mrb[4].mxu0 %vm673_vm0, %v2653_v51 }
 0x166   : > { %2456 = vmatprep.mubr.msk.bf16.mxu0 %vm673_vm0, %v2654_v52 }
 0x169   : > { %2471 = vmatmul.mubr.msk.bf16.gmra.mrb[4].mxu1 %vm673_vm0, %v2653_v51 }
 0x16a   : > { %2474 = vmatprep.mubr.msk.bf16.mxu1 %vm673_vm0, %v2654_v52 }
 0x16d   : > { %2457 = vmatmul.mubr.msk.bf16.gmra.mrb[8].mxu0 %vm673_vm0, %v2655_v53 }
 0x16e   : > { %2460 = vmatprep.mubr.msk.bf16.mxu0 %vm673_vm0, %v2656_v54 }
 0x171   : > { %2475 = vmatmul.mubr.msk.bf16.gmra.mrb[8].mxu1 %vm673_vm0, %v2655_v53 }
 0x172   : > { %2478 = vmatprep.mubr.msk.bf16.mxu1 %vm673_vm0, %v2656_v54 }
 0x175   : > { %2461 = vmatmul.mubr.msk.bf16.gmra.mrb[12].mxu0 %vm673_vm0, %v2657_v55 }
 0x179   : > { %2479 = vmatmul.mubr.msk.bf16.gmra.mrb[12].mxu1 %vm673_vm0, %v2657_v55 }
 0x230   : > { %v2450_v58 = vpop.f32.mrb[0].mxu0 }
 0x231   : > { %v3113_v60 = vadd.f32 %v2450_v58, %v566_v57  ;;  %v736_v61 = vpop.f32.mrb[1].mxu0 }
 0x232   : > { %v3115_v63 = vadd.f32 %v736_v61, %v556_v59  ;;  %v2451_v0 = vpop.f32.mrb[2].mxu0 }
 0x233   : > { %v3118_v1 = vmul.f32 0.70710677, %v3113_v60  ;;  %v3120_v2 = vadd.f32 %v2451_v0, %v571_v62  ;;  %v739_v3 = vpop.f32.mrb[3].mxu0 }
 0x234   : > { %v3123_v4 = vmul.f32 0.70710677, %v3115_v63  ;;  %v3125_v5 = vadd.f32 %v739_v3, %v561_v56  ;;  %v2468_v6 = vpop.f32.mrb[0].mxu1 }
 0x235   : > { %v965_v7 = vand.u32 2147483647, %v3118_v1  ;;  %v3129_v8 = vmul.f32 0.70710677, %v3120_v2  ;;  %v836_v21 = vpop.f32.mrb[1].mxu1  ;;  %v3147_v38 = vadd.f32 %v2468_v6, %v566_v57  ;;  %vm1605_vm2 = vcmp.lt.f32.partialorder %v3118_v1, 0.0 }
 0x236   : > { %v963_v9 = vand.u32 2147483647, %v3123_v4  ;;  %v3133_v10 = vmul.f32 0.70710677, %v3125_v5  ;;  %v2469_v27 = vpop.f32.mrb[2].mxu1  ;;  %v3149_v39 = vadd.f32 %v836_v21, %v556_v59  ;;  %vm1603_vm3 = vcmp.lt.f32.partialorder %v3123_v4, 0.0 }
 0x237   : > { %v997_v11 = vmul.f32 0.3275911, %v965_v7  ;;  %v1413_v12 = vsub.f32 0.0, %v965_v7  ;;  %v966_v13 = vand.u32 2147483647, %v3129_v8  ;;  %v839_v31 = vpop.f32.mrb[3].mxu1  ;;  %v3155_v43 = vadd.f32 %v2469_v27, %v571_v62  ;;  %v3184_v62 = vpop.permute.xlu1 %580 }
 0x238   : > { %v995_v14 = vmul.f32 0.3275911, %v963_v9  ;;  %v1411_v15 = vsub.f32 0.0, %v963_v9  ;;  %v964_v16 = vand.u32 2147483647, %v3133_v10  ;;  %v3137_v22 = vpop.f32.mrb[4].mxu0  ;;  %v3162_v47 = vadd.f32 %v839_v31, %v561_v56 }
 0x239   : > { %v1029_v17 = vadd.f32 1.0, %v997_v11  ;;  %v1445_v18 = vmul.f32 %v1413_v12, %v965_v7  ;;  %v998_v19 = vmul.f32 0.3275911, %v966_v13  ;;  %v1414_v20 = vsub.f32 0.0, %v966_v13  ;;  %v3139_v28 = vpop.f32.mrb[5].mxu0 }
 0x23a   : > { %v1027_v23 = vadd.f32 1.0, %v995_v14  ;;  %v1443_v24 = vmul.f32 %v1411_v15, %v963_v9  ;;  %v996_v25 = vmul.f32 0.3275911, %v964_v16  ;;  %v1412_v26 = vsub.f32 0.0, %v964_v16  ;;  %v3141_v32 = vpop.f32.mrb[6].mxu0 }
 0x23b   : > { %2678 = vrcp.f32 %v1029_v17  ;;  %v1030_v29 = vadd.f32 1.0, %v998_v19  ;;  %v1446_v30 = vmul.f32 %v1414_v20, %v966_v13  ;;  %v1479_v33 = vmul.f32 1.442695, %v1445_v18  ;;  %v3143_v34 = vpop.f32.mrb[7].mxu0 }
 0x23c   : > { %2680 = vrcp.f32 %v1027_v23  ;;  %v3145_v35 = vpop.f32.mrb[4].mxu1  ;;  %v1028_v36 = vadd.f32 1.0, %v996_v25  ;;  %v1444_v37 = vmul.f32 %v1412_v26, %v964_v16  ;;  %v1475_v42 = vmul.f32 1.442695, %v1443_v24 }
 0x23d   : > { %v3151_v40 = vpop.f32.mrb[5].mxu1  ;;  %2682 = vrcp.f32 %v1030_v29  ;;  %v1481_v45 = vmul.f32 1.442695, %v1446_v30  ;;  %v3160_v46 = vmul.f32 0.70710677, %v3147_v38  ;;  %vm1606_vm4 = vcmp.lt.f32.partialorder %v3129_v8, 0.0 }
 0x23e   : > { %v3157_v44 = vpop.f32.mrb[6].mxu1  ;;  %2684 = vpow2.f32 %v1479_v33  ;;  %v3167_v49 = vmul.f32 0.70710677, %v3149_v39  ;;  %v3170_v50 = vmul.f32 0.70710677, %v3155_v43  ;;  %vm1604_vm5 = vcmp.lt.f32.partialorder %v3133_v10, 0.0 }
 0x23f   : > { %v3164_v48 = vpop.f32.mrb[7].mxu1  ;;  %2686 = vrcp.f32 %v1028_v36  ;;  %v1477_v52 = vmul.f32 1.442695, %v1444_v37  ;;  %v981_v53 = vand.u32 2147483647, %v3160_v46  ;;  %vm1621_vm6 = vcmp.lt.f32.partialorder %v3160_v46, 0.0 }
 0x240   : > { %v3172_v51 = vpop.f32.mrb[8].mxu0  ;;  %2688 = vpow2.f32 %v1475_v42  ;;  %v979_v55 = vand.u32 2147483647, %v3167_v49  ;;  %v982_v56 = vand.u32 2147483647, %v3170_v50  ;;  %v918_v46 = vmul.f32 0.5, %v3155_v43 }
 0x241   : > { %v3175_v54 = vpop.f32.mrb[9].mxu0  ;;  %2690 = vpow2.f32 %v1481_v45  ;;  %v1013_v58 = vmul.f32 0.3275911, %v981_v53  ;;  %v1429_v59 = vsub.f32 0.0, %v981_v53  ;;  %v3182_v61 = vmul.f32 0.70710677, %v3162_v47  ;;  %v3207_v45 = vpop.permute.xlu1 %585 }
 0x242   : > { %v3179_v57 = vpop.f32.mrb[10].mxu0  ;;  %v1011_v0 = vmul.f32 0.3275911, %v979_v55  ;;  %v1427_v3 = vsub.f32 0.0, %v979_v55  ;;  %v1014_v6 = vmul.f32 0.3275911, %v982_v56  ;;  %2692 = vpow2.f32 %v1477_v52 }
 0x243   : > { %4198 = vst [vmem:[#allocation7_spill] sm:$0xff] %v3179_v57  ;;  %v1430_v7 = vsub.f32 0.0, %v982_v56  ;;  %v1045_v11 = vadd.f32 1.0, %v1013_v58  ;;  %v1461_v12 = vmul.f32 %v1429_v59, %v981_v53  ;;  %v980_v13 = vand.u32 2147483647, %v3182_v61  ;;  %v3189_v14 = vpop.f32.mrb[11].mxu0 }
 0x244   : > { %4199 = vst [vmem:[#allocation8_spill] sm:$0xff] %v3189_v14  ;;  %v3191_v15 = vpop.f32.mrb[8].mxu1  ;;  %v1043_v18 = vadd.f32 1.0, %v1011_v0  ;;  %v1459_v19 = vmul.f32 %v1427_v3, %v979_v55  ;;  %v1046_v20 = vadd.f32 1.0, %v1014_v6  ;;  %v3218_v6 = vadd.f32 %v3137_v22, %v3207_v45 }
 0x245   : > { %v3186_v9 = vpop.eup %2678  ;;  %4200 = vst [vmem:[#allocation9_spill] sm:$0xff] %v3191_v15  ;;  %v3196_v21 = vpop.f32.mrb[9].mxu1  ;;  %2694 = vrcp.f32 %v1045_v11  ;;  %v1511_v24 = vmul.f32 1.442695, %v1461_v12  ;;  %v1462_v25 = vmul.f32 %v1430_v7, %v982_v56  ;;  %v1012_v30 = vmul.f32 0.3275911, %v980_v13 }
 0x246   : > { %v3193_v16 = vpop.eup %2680  ;;  %v1125_v17 = vmul.f32 1.0614054, %v3186_v9  ;;  %4201 = vst [vmem:[#allocation10_spill] sm:$0xff] %v3196_v21  ;;  %v3199_v26 = vpop.f32.mrb[10].mxu1  ;;  %2696 = vrcp.f32 %v1043_v18  ;;  %v1507_v29 = vmul.f32 1.442695, %v1459_v19 }
 0x247   : > { %v1123_v23 = vmul.f32 1.0614054, %v3193_v16  ;;  %4202 = vst [vmem:[#allocation11_spill] sm:$0xff] %v3199_v26  ;;  %v3201_v31 = vpop.eup %2682  ;;  %2698 = vpow2.f32 %v1511_v24  ;;  %v1428_v36 = vsub.f32 0.0, %v980_v13  ;;  %v3203_v37 = vpop.f32.mrb[11].mxu1  ;;  %v1044_v56 = vadd.f32 1.0, %v1012_v30 }
 0x248   : > { %v1157_v27 = vadd.f32 -1.4531521, %v1125_v17  ;;  %4203 = vst [vmem:[#allocation12_spill] sm:$0xff] %v3203_v37  ;;  %v3205_v42 = vpop.eup %2684  ;;  %v1126_v53 = vmul.f32 1.0614054, %v3201_v31  ;;  %v3211_v58 = vpop.f32.mrb[12].mxu0  ;;  %2700 = vrcp.f32 %v1046_v20 }
 0x249   : > { %v1155_v33 = vadd.f32 -1.4531521, %v1123_v23  ;;  %v1513_v55 = vmul.f32 1.442695, %v1462_v25  ;;  %4204 = vst [vmem:[#allocation13_spill] sm:$0xff] %v3211_v58  ;;  %v3213_v59 = vpop.eup %2686  ;;  %v1460_v3 = vmul.f32 %v1428_v36, %v980_v13  ;;  %v3220_v7 = vpop.f32.mrb[13].mxu0  ;;  %2702 = vpow2.f32 %v1507_v29 }
 0x24a   : > { %v1189_v52 = vmul.f32 %v3186_v9, %v1157_v27  ;;  %4205 = vst [vmem:[#allocation14_spill] sm:$0xff] %v3220_v7  ;;  %v3222_v11 = vpop.eup %2688  ;;  %v1158_v17 = vadd.f32 -1.4531521, %v1126_v53  ;;  %v1124_v18 = vmul.f32 1.0614054, %v3213_v59  ;;  %2704 = vrcp.f32 %v1044_v56  ;;  %v3227_v20 = vpop.f32.mrb[14].mxu0 }
 0x24b   : > { %v1187_v0 = vmul.f32 %v3193_v16, %v1155_v33  ;;  %v3225_v19 = vpop.eup %2690  ;;  %v1509_v24 = vmul.f32 1.442695, %v1460_v3  ;;  %4206 = vst [vmem:[#allocation15_spill] sm:$0xff] %v3227_v20  ;;  %v3232_v27 = vmul.f32 0.70710677, %v3218_v6  ;;  %v3237_v33 = vmul.f32 0.5, %v3113_v60 }
 0x24c   : > { %v1221_v12 = vadd.f32 1.4214138, %v1189_v52  ;;  %v1190_v22 = vmul.f32 %v3201_v31, %v1158_v17  ;;  %v1156_v25 = vadd.f32 -1.4531521, %v1124_v18  ;;  %v3234_v30 = vpop.eup %2692  ;;  %v3240_v29 = vmul.f32 0.5, %v3115_v63 }
 0x24d   : > { %v1219_v23 = vadd.f32 1.4214138, %v1187_v0  ;;  %2706 = vpow2.f32 %v1513_v55  ;;  %v3245_v0 = vand.u32 2147483647, %v3232_v27  ;;  %v3250_v17 = vmul.f32 0.5, %v3120_v2 }
 0x24e   : > { %v1253_v13 = vmul.f32 %v3186_v9, %v1221_v12  ;;  %v1222_v53 = vadd.f32 1.4214138, %v1190_v22  ;;  %v1188_v56 = vmul.f32 %v3213_v59, %v1156_v25  ;;  %v3253_v60 = vmul.f32 0.5, %v3125_v5 }
 0x24f   : > { %v1251_v36 = vmul.f32 %v3193_v16, %v1219_v23  ;;  %v3247_v3 = vpop.eup %2694  ;;  %2708 = vpow2.f32 %v1509_v24  ;;  %v3267_v5 = vadd.f32 %v3139_v28, %v3153_v41  ;;  %v1417_v37 = vsub.f32 0.0, %v3245_v0 }
 0x250   : > { %v1285_v52 = vadd.f32 -0.28449672, %v1253_v13  ;;  %v3255_v63 = vpop.eup %2696  ;;  %v1254_v18 = vmul.f32 %v3201_v31, %v1222_v53  ;;  %v1220_v23 = vadd.f32 1.4214138, %v1188_v56  ;;  %v1141_v13 = vmul.f32 1.0614054, %v3247_v3 }
 0x251   : > { %v1283_v12 = vadd.f32 -0.28449672, %v1251_v36  ;;  %v3260_v22 = vpop.eup %2698  ;;  %v1139_v2 = vmul.f32 1.0614054, %v3255_v63  ;;  %v1001_v36 = vmul.f32 0.3275911, %v3245_v0  ;;  %v1449_v4 = vmul.f32 %v1417_v37, %v3245_v0 }
 0x252   : > { %v1317_v55 = vmul.f32 %v3186_v9, %v1285_v52  ;;  %v1286_v20 = vadd.f32 -0.28449672, %v1254_v18  ;;  %v1252_v52 = vmul.f32 %v3213_v59, %v1220_v23  ;;  %v1173_v53 = vadd.f32 -1.4531521, %v1141_v13  ;;  %v3270_v56 = vpop.eup %2700 }
 0x253   : > { %v1315_v25 = vmul.f32 %v3193_v16, %v1283_v12  ;;  %v1171_v58 = vadd.f32 -1.4531521, %v1139_v2  ;;  %v1033_v12 = vadd.f32 1.0, %v1001_v36  ;;  %v3274_v26 = vpop.eup %2702  ;;  %v1142_v2 = vmul.f32 1.0614054, %v3270_v56  ;;  %v3285_v36 = vpop.f32.mrb[15].mxu0 }
 0x254   : > { %v1349_v24 = vadd.f32 0.2548296, %v1317_v55  ;;  %v1318_v28 = vmul.f32 %v3201_v31, %v1286_v20  ;;  %v1284_v55 = vadd.f32 -0.28449672, %v1252_v52  ;;  %v1205_v18 = vmul.f32 %v3247_v3, %v1173_v53  ;;  %v3280_v23 = vpop.eup %2704  ;;  %4207 = vst [vmem:[#allocation16_spill] sm:$0xff] %v3285_v36 }
 0x255   : > { %v1347_v7 = vadd.f32 0.2548296, %v1315_v25  ;;  %v1203_v25 = vmul.f32 %v3255_v63, %v1171_v58  ;;  %2710 = vrcp.f32 %v1033_v12  ;;  %v1140_v58 = vmul.f32 1.0614054, %v3280_v23 }
 0x256   : > { %v1381_v21 = vmul.f32 %v3186_v9, %v1349_v24  ;;  %v1350_v24 = vadd.f32 0.2548296, %v1318_v28  ;;  %v1316_v15 = vmul.f32 %v3213_v59, %v1284_v55  ;;  %v1237_v20 = vadd.f32 1.4214138, %v1205_v18 }
 0x257   : > { %v1379_v13 = vmul.f32 %v3193_v16, %v1347_v7  ;;  %v3289_v52 = vpop.eup %2706  ;;  %v1235_v16 = vadd.f32 1.4214138, %v1203_v25  ;;  %v1174_v7 = vadd.f32 -1.4531521, %v1142_v2  ;;  %v1172_v18 = vadd.f32 -1.4531521, %v1140_v58 }
 0x258   : > { %v1541_v9 = vmul.f32 %v3205_v42, %v1381_v21  ;;  %v1382_v12 = vmul.f32 %v3201_v31, %v1350_v24  ;;  %v1348_v36 = vadd.f32 0.2548296, %v1316_v15  ;;  %v1269_v21 = vmul.f32 %v3247_v3, %v1237_v20 }
 0x259   : > { %v1539_v53 = vmul.f32 %v3222_v11, %v1379_v13  ;;  %v3296_v42 = vpop.eup %2708  ;;  %v1267_v55 = vmul.f32 %v3255_v63, %v1235_v16  ;;  %v1206_v11 = vmul.f32 %v3270_v56, %v1174_v7  ;;  %v1204_v20 = vmul.f32 %v3280_v23, %v1172_v18 }
 0x25a   : > { %v1573_v14 = vsub.f32 1.0, %v1541_v9  ;;  %v1542_v25 = vmul.f32 %v3225_v19, %v1382_v12  ;;  %v1380_v2 = vmul.f32 %v3213_v59, %v1348_v36  ;;  %v1301_v9 = vadd.f32 -0.28449672, %v1269_v21  ;;  %v3315_v12 = vpop.f32.mrb[12].mxu1 }
 0x25b   : > { %v1571_v28 = vsub.f32 1.0, %v1539_v53  ;;  %v1299_v15 = vadd.f32 -0.28449672, %v1267_v55  ;;  %v1238_v24 = vadd.f32 1.4214138, %v1206_v11  ;;  %vm1619_vm7 = vcmp.lt.f32.partialorder %v3167_v49, 0.0 }
 0x25c   : > { %v1637_v13 = vsub.f32 0.0, %v1573_v14  ;;  %v1574_v57 = vsub.f32 1.0, %v1542_v25  ;;  %v1540_v16 = vmul.f32 %v3234_v30, %v1380_v2  ;;  %v1333_v7 = vmul.f32 %v3247_v3, %v1301_v9 }
 0x25d   : > { %v1635_v31 = vsub.f32 0.0, %v1571_v28  ;;  %v1331_v19 = vmul.f32 %v3255_v63, %v1299_v15  ;;  %v1270_v59 = vmul.f32 %v3270_v56, %v1238_v24  ;;  %v3313_v36 = vmul.f32 0.70710677, %v3267_v5 }
 0x25e   : > { %v1669_v53 = vsel %vm1605_vm2, %v1637_v13, %v1573_v14  ;;  %v1638_v1 = vsub.f32 0.0, %v1574_v57  ;;  %v1572_v14 = vsub.f32 1.0, %v1540_v16  ;;  %v1365_v55 = vadd.f32 0.2548296, %v1333_v7 }
 0x25f   : > { %v1667_v58 = vsel %vm1603_vm3, %v1635_v31, %v1571_v28  ;;  %v1701_v21 = vadd.f32 1.0, %v1669_v53  ;;  %v3317_v11 = vpop.eup %2710  ;;  %v1363_v30 = vadd.f32 0.2548296, %v1331_v19  ;;  %v1302_v18 = vadd.f32 -0.28449672, %v1270_v59  ;;  %v3340_v59 = vpop.f32.mrb[13].mxu1 }
 0x260   : > { %v1236_v13 = vadd.f32 1.4214138, %v1204_v20  ;;  %v1699_v28 = vadd.f32 1.0, %v1667_v58  ;;  %v1670_v25 = vsel %vm1606_vm4, %v1638_v1, %v1574_v57  ;;  %v1636_v2 = vsub.f32 0.0, %v1572_v14 }
 0x261   : > { %v1397_v9 = vmul.f32 %v3247_v3, %v1365_v55  ;;  %v1702_v31 = vadd.f32 1.0, %v1670_v25  ;;  %v1395_v15 = vmul.f32 %v3255_v63, %v1363_v30  ;;  %v1334_v24 = vmul.f32 %v3270_v56, %v1302_v18  ;;  %v3357_v18 = vpop.permute.xlu1 %590 }
 0x262   : > { %v1268_v53 = vmul.f32 %v3280_v23, %v1236_v13  ;;  %v3327_v16 = vmul.f32 %v1701_v21, %v3237_v33  ;;  %v1668_v37 = vsel %vm1604_vm5, %v1636_v2, %v1572_v14  ;;  %v1129_v8 = vmul.f32 1.0614054, %v3317_v11 }
 0x263   : > { %v1557_v0 = vmul.f32 %v3260_v22, %v1397_v9  ;;  %v3334_v57 = vmul.f32 %v1702_v31, %v3250_v17  ;;  %v1700_v3 = vadd.f32 1.0, %v1668_v37  ;;  %v1555_v63 = vmul.f32 %v3274_v26, %v1395_v15 }
 0x264   : > { %v1366_v20 = vadd.f32 0.2548296, %v1334_v24  ;;  %v3338_v7 = vmul.f32 %v1699_v28, %v3240_v29  ;;  %v1300_v33 = vadd.f32 -0.28449672, %v1268_v53  ;;  %v1161_v19 = vadd.f32 -1.4531521, %v1129_v8 }
 0x265   : > { %v1589_v58 = vsub.f32 1.0, %v1557_v0  ;;  %v3345_v22 = vmul.f32 %v1700_v3, %v3253_v60  ;;  %v1587_v17 = vsub.f32 1.0, %v1555_v63  ;;  %v3351_v14 = vand.u32 2147483647, %v3313_v36  ;;  %v3365_v24 = vpop.f32.mrb[14].mxu1 }
 0x266   : > { %v1398_v21 = vmul.f32 %v3270_v56, %v1366_v20  ;;  %v1332_v26 = vmul.f32 %v3280_v23, %v1300_v33  ;;  %v1193_v29 = vmul.f32 %v3317_v11, %v1161_v19  ;;  %v1487_v60 = vmul.f32 1.442695, %v1449_v4 }
 0x267   : > { %v1653_v1 = vsub.f32 0.0, %v1589_v58  ;;  %v999_v25 = vmul.f32 0.3275911, %v3351_v14  ;;  %v917_v2 = vmul.f32 0.5, %v3147_v38  ;;  %v1651_v9 = vsub.f32 0.0, %v1587_v17 }
 0x268   : > { %v1558_v30 = vmul.f32 %v3289_v52, %v1398_v21  ;;  %v1364_v56 = vadd.f32 0.2548296, %v1332_v26  ;;  %v1225_v28 = vadd.f32 1.4214138, %v1193_v29  ;;  %v3363_v15 = vadd.f32 %v3141_v32, %v3357_v18 }
 0x269   : > { %v1685_v13 = vsel %vm1621_vm6, %v1653_v1, %v1589_v58  ;;  %v1031_v53 = vadd.f32 1.0, %v999_v25  ;;  %2712 = vpow2.f32 %v1487_v60  ;;  %vm1622_vm8 = vcmp.lt.f32.partialorder %v3170_v50, 0.0 }
 0x26a   : > { %v1590_v31 = vsub.f32 1.0, %v1558_v30  ;;  %v1396_v52 = vmul.f32 %v3280_v23, %v1364_v56  ;;  %v1257_v4 = vmul.f32 %v3317_v11, %v1225_v28  ;;  %v1717_v37 = vadd.f32 1.0, %v1685_v13 }
 0x26b   : > { %2714 = vrcp.f32 %v1031_v53  ;;  %v1683_v8 = vsel %vm1619_vm7, %v1651_v9, %v1587_v17  ;;  %v3374_v43 = vmul.f32 0.70710677, %v3363_v15  ;;  %v3378_v23 = vadd.f32 %v3143_v34, %v3184_v62 }
 0x26c   : > { %v1654_v0 = vsub.f32 0.0, %v1590_v31  ;;  %v1556_v38 = vmul.f32 %v3296_v42, %v1396_v52  ;;  %v1289_v32 = vadd.f32 -0.28449672, %v1257_v4  ;;  %v3383_v50 = vadd.f32 %v3145_v35, %v3207_v45  ;;  %v3385_v42 = vpop.f32.mrb[15].mxu1 }
 0x26d   : > { %v3387_v58 = vmul.f32 %v1717_v37, %v917_v2  ;;  %v915_v33 = vmul.f32 0.5, %v3149_v39  ;;  %vm1620_vm9 = vcmp.lt.f32.partialorder %v3182_v61, 0.0  ;;  %v970_v19 = vand.u32 2147483647, %v3374_v43 }
 0x26e   : > { %v1686_v3 = vsel %vm1622_vm8, %v1654_v0, %v1590_v31  ;;  %v1588_v20 = vsub.f32 1.0, %v1556_v38  ;;  %v1321_v49 = vmul.f32 %v3317_v11, %v1289_v32  ;;  %v3395_v1 = vmul.f32 0.70710677, %v3378_v23 }
 0x26f   : > { %v1718_v63 = vadd.f32 1.0, %v1686_v3  ;;  %4208 = vst [vmem:[#allocation17_spill] sm:$0xff] %v3387_v58  ;;  %v1715_v26 = vadd.f32 1.0, %v1683_v8  ;;  %v1415_v35 = vsub.f32 0.0, %v3351_v14  ;;  %v1002_v45 = vmul.f32 0.3275911, %v970_v19 }
 0x270   : > { %v1652_v17 = vsub.f32 0.0, %v1588_v20  ;;  %v1353_v21 = vadd.f32 0.2548296, %v1321_v49  ;;  %v3399_v29 = vmul.f32 0.70710677, %v3383_v50  ;;  %v916_v13 = vmul.f32 0.5, %v3162_v47 }
 0x271   : > { %v3392_v34 = vmul.f32 %v1718_v63, %v918_v46  ;;  %v968_v60 = vand.u32 2147483647, %v3395_v1  ;;  %v1034_v28 = vadd.f32 1.0, %v1002_v45  ;;  %v1418_v25 = vsub.f32 0.0, %v970_v19  ;;  %v3417_v63 = vpop.permute.xlu1 %595 }
 0x272   : > { %v1684_v61 = vsel %vm1620_vm9, %v1652_v17, %v1588_v20  ;;  %v1385_v30 = vmul.f32 %v3317_v11, %v1353_v21  ;;  %v985_v9 = vand.u32 2147483647, %v3399_v29  ;;  %v3407_v46 = vmul.f32 %v1715_v26, %v915_v33 }
 0x273   : > { %v1716_v56 = vadd.f32 1.0, %v1684_v61  ;;  %v1000_v2 = vmul.f32 0.3275911, %v968_v60  ;;  %v2713_v31 = vpop.eup %2712  ;;  %2716 = vrcp.f32 %v1034_v28  ;;  %v1447_v11 = vmul.f32 %v1415_v35, %v3351_v14 }
 0x274   : > { %v1545_v53 = vmul.f32 %v2713_v31, %v1385_v30  ;;  %v1017_v0 = vmul.f32 0.3275911, %v985_v9  ;;  %v1450_v32 = vmul.f32 %v1418_v25, %v970_v19  ;;  %v1416_v8 = vsub.f32 0.0, %v968_v60 }
 0x275   : > { %v3409_v52 = vmul.f32 %v1716_v56, %v916_v13  ;;  %v3411_v4 = vpop.eup %2714  ;;  %v1032_v37 = vadd.f32 1.0, %v1000_v2  ;;  %v3421_v49 = vadd.f32 %v3151_v40, %v3153_v41  ;;  %v3425_v14 = vadd.f32 %v3157_v44, %v3357_v18  ;;  %v3452_v13 = vpop.permute.xlu1 %605 }
 0x276   : > { %v1127_v38 = vmul.f32 1.0614054, %v3411_v4  ;;  %v1049_v3 = vadd.f32 1.0, %v1017_v0  ;;  %v3428_v33 = vmul.f32 0.5, %v3218_v6  ;;  %v1577_v17 = vsub.f32 1.0, %v1545_v53 }
 0x277   : > { %2718 = vrcp.f32 %v1032_v37  ;;  %v1483_v21 = vmul.f32 1.442695, %v1447_v11  ;;  %v1489_v26 = vmul.f32 1.442695, %v1450_v32  ;;  %v3433_v35 = vadd.f32 %v3164_v48, %v3184_v62 }
 0x278   : > { %v1159_v20 = vadd.f32 -1.4531521, %v1127_v38  ;;  %2720 = vrcp.f32 %v1049_v3  ;;  %vm1609_vm10 = vcmp.lt.f32.partialorder %v3232_v27, 0.0  ;;  %v1448_v40 = vmul.f32 %v1416_v8, %v968_v60 }
 0x279   : > { %v3437_v41 = vmul.f32 0.70710677, %v3421_v49  ;;  %v3440_v44 = vmul.f32 0.70710677, %v3425_v14  ;;  %v3443_v6 = vmul.f32 0.5, %v3267_v5  ;;  %v3446_v45 = vmul.f32 0.5, %v3363_v15 }
 0x27a   : > { %v1191_v19 = vmul.f32 %v3411_v4, %v1159_v20  ;;  %v1433_v61 = vsub.f32 0.0, %v985_v9  ;;  %v1641_v30 = vsub.f32 0.0, %v1577_v17  ;;  %2722 = vpow2.f32 %v1483_v21 }
 0x27b   : > { %v983_v48 = vand.u32 2147483647, %v3437_v41  ;;  %v986_v62 = vand.u32 2147483647, %v3440_v44  ;;  %2724 = vpow2.f32 %v1489_v26  ;;  %v3456_v5 = vmul.f32 0.5, %v3378_v23 }
 0x27c   : > { %v1223_v18 = vadd.f32 1.4214138, %v1191_v19  ;;  %v3459_v15 = vmul.f32 0.70710677, %v3433_v35  ;;  %v1485_v25 = vmul.f32 1.442695, %v1448_v40  ;;  %v3464_v31 = vadd.f32 %v3172_v51, %v3452_v13 }
 0x27d   : > { %v3450_v60 = vpop.eup %2716  ;;  %v1015_v2 = vmul.f32 0.3275911, %v983_v48  ;;  %v1465_v11 = vmul.f32 %v1433_v61, %v985_v9  ;;  %v1018_v37 = vmul.f32 0.3275911, %v986_v62  ;;  %v1673_v23 = vsel %vm1609_vm10, %v1641_v30, %v1577_v17 }
 0x27e   : > { %v1255_v56 = vmul.f32 %v3411_v4, %v1223_v18  ;;  %v1130_v28 = vmul.f32 1.0614054, %v3450_v60  ;;  %v984_v0 = vand.u32 2147483647, %v3459_v15  ;;  %v1431_v3 = vsub.f32 0.0, %v983_v48 }
 0x27f   : > { %v1047_v8 = vadd.f32 1.0, %v1015_v2  ;;  %v1050_v19 = vadd.f32 1.0, %v1018_v37  ;;  %v1434_v9 = vsub.f32 0.0, %v986_v62  ;;  %v3475_v40 = vmul.f32 0.70710677, %v3464_v31 }
 0x280   : > { %v1287_v53 = vadd.f32 -0.28449672, %v1255_v56  ;;  %v1162_v32 = vadd.f32 -1.4531521, %v1130_v28  ;;  %v1016_v51 = vmul.f32 0.3275911, %v984_v0  ;;  %v1463_v28 = vmul.f32 %v1431_v3, %v983_v48 }
 0x281   : > { %v3467_v38 = vpop.eup %2718  ;;  %2726 = vrcp.f32 %v1047_v8  ;;  %v1432_v2 = vsub.f32 0.0, %v984_v0  ;;  %v1466_v48 = vmul.f32 %v1434_v9, %v986_v62  ;;  %vm1607_vm11 = vcmp.lt.f32.partialorder %v3313_v36, 0.0 }
 0x282   : > { %v1319_v20 = vmul.f32 %v3411_v4, %v1287_v53  ;;  %v1128_v21 = vmul.f32 1.0614054, %v3467_v38  ;;  %v1194_v26 = vmul.f32 %v3450_v60, %v1162_v32  ;;  %v3477_v18 = vpop.eup %2720  ;;  %2728 = vrcp.f32 %v1050_v19 }
 0x283   : > { %v1048_v61 = vadd.f32 1.0, %v1016_v51  ;;  %v1145_v56 = vmul.f32 1.0614054, %v3477_v18  ;;  %v1705_v53 = vadd.f32 1.0, %v1673_v23  ;;  %2730 = vpow2.f32 %v1485_v25 }
 0x284   : > { %v1351_v27 = vadd.f32 0.2548296, %v1319_v20  ;;  %v1160_v17 = vadd.f32 -1.4531521, %v1128_v21  ;;  %v1226_v30 = vadd.f32 1.4214138, %v1194_v26  ;;  %v2723_v8 = vpop.eup %2722  ;;  %v3485_v20 = vadd.f32 %v3175_v54, %v3417_v63 }
 0x285   : > { %v1177_v10 = vadd.f32 -1.4531521, %v1145_v56  ;;  %2732 = vrcp.f32 %v1048_v61  ;;  %v2725_v21 = vpop.eup %2724  ;;  %v1519_v51 = vmul.f32 1.442695, %v1465_v11  ;;  %v973_v23 = vand.u32 2147483647, %v3475_v40 }
 0x286   : > { %v1383_v37 = vmul.f32 %v3411_v4, %v1351_v27  ;;  %v1192_v32 = vmul.f32 %v3467_v38, %v1160_v17  ;;  %v1258_v39 = vmul.f32 %v3450_v60, %v1226_v30  ;;  %v1515_v26 = vmul.f32 1.442695, %v1463_v28 }
 0x287   : > { %v1209_v4 = vmul.f32 %v3477_v18, %v1177_v10  ;;  %v1464_v25 = vmul.f32 %v1432_v2, %v984_v0  ;;  %v3491_v61 = vmul.f32 0.5, %v3383_v50  ;;  %v1005_v30 = vmul.f32 0.3275911, %v973_v23 }
 0x288   : > { %v1224_v19 = vadd.f32 1.4214138, %v1192_v32  ;;  %v1290_v3 = vadd.f32 -0.28449672, %v1258_v39  ;;  %v1543_v27 = vmul.f32 %v2723_v8, %v1383_v37  ;;  %v3494_v54 = vmul.f32 %v1705_v53, %v3428_v33 }
 0x289   : > { %v1241_v62 = vadd.f32 1.4214138, %v1209_v4  ;;  %v3498_v9 = vmul.f32 0.70710677, %v3485_v20  ;;  %2734 = vpow2.f32 %v1519_v51  ;;  %v1521_v10 = vmul.f32 1.442695, %v1466_v48 }
 0x28a   : > { %v1256_v17 = vmul.f32 %v3467_v38, %v1224_v19  ;;  %4209 = vst [vmem:[#allocation18_spill] sm:$0xff] %v3494_v54  ;;  %v1322_v11 = vmul.f32 %v3450_v60, %v1290_v3  ;;  %v1037_v0 = vadd.f32 1.0, %v1005_v30  ;;  %2736 = vpow2.f32 %v1515_v26 }
 0x28b   : > { %v3500_v56 = vpop.eup %2726  ;;  %v1273_v28 = vmul.f32 %v3477_v18, %v1241_v62  ;;  %v1517_v33 = vmul.f32 1.442695, %v1464_v25  ;;  %v1575_v53 = vsub.f32 1.0, %v1543_v27  ;;  %vm1610_vm12 = vcmp.lt.f32.partialorder %v3374_v43, 0.0 }
 0x28c   : > { %v1288_v39 = vadd.f32 -0.28449672, %v1256_v17  ;;  %v1354_v50 = vadd.f32 0.2548296, %v1322_v11  ;;  %v3504_v2 = vpop.eup %2728  ;;  %v1143_v32 = vmul.f32 1.0614054, %v3500_v56  ;;  %2738 = vrcp.f32 %v1037_v0 }
 0x28d   : > { %v1305_v19 = vadd.f32 -0.28449672, %v1273_v28  ;;  %v1146_v51 = vmul.f32 1.0614054, %v3504_v2  ;;  %v3512_v48 = vand.u32 2147483647, %v3498_v9  ;;  %v2731_v3 = vpop.eup %2730  ;;  %2740 = vpow2.f32 %v1521_v10 }
 0x28e   : > { %v1320_v37 = vmul.f32 %v3467_v38, %v1288_v39  ;;  %v1386_v8 = vmul.f32 %v3450_v60, %v1354_v50  ;;  %v1175_v26 = vadd.f32 -1.4531521, %v1143_v32  ;;  %v1421_v25 = vsub.f32 0.0, %v973_v23 }
 0x28f   : > { %v3514_v27 = vpop.eup %2732  ;;  %vm1608_vm13 = vcmp.lt.f32.partialorder %v3395_v1, 0.0  ;;  %v1337_v30 = vmul.f32 %v3477_v18, %v1305_v19  ;;  %v1178_v11 = vadd.f32 -1.4531521, %v1146_v51  ;;  %2742 = vpow2.f32 %v1517_v33 }
 0x290   : > { %v1352_v4 = vadd.f32 0.2548296, %v1320_v37  ;;  %v1546_v17 = vmul.f32 %v2725_v21, %v1386_v8  ;;  %v1639_v60 = vsub.f32 0.0, %v1575_v53  ;;  %v1207_v39 = vmul.f32 %v3500_v56, %v1175_v26  ;;  %v3523_v21 = vpop.permute.xlu0 %600 }
 0x291   : > { %v1144_v0 = vmul.f32 1.0614054, %v3514_v27  ;;  %v1369_v28 = vadd.f32 0.2548296, %v1337_v30  ;;  %v1210_v10 = vmul.f32 %v3504_v2, %v1178_v11  ;;  %v1003_v37 = vmul.f32 0.3275911, %v3512_v48 }
 0x292   : > { %v1384_v62 = vmul.f32 %v3467_v38, %v1352_v4  ;;  %v1578_v50 = vsub.f32 1.0, %v1546_v17  ;;  %v1239_v8 = vadd.f32 1.4214138, %v1207_v39  ;;  %v1453_v51 = vmul.f32 %v1421_v25, %v973_v23 }
 0x293   : > { %v1176_v19 = vadd.f32 -1.4531521, %v1144_v0  ;;  %v1401_v47 = vmul.f32 %v3477_v18, %v1369_v28  ;;  %v1242_v38 = vadd.f32 1.4214138, %v1210_v10  ;;  %v1035_v4 = vadd.f32 1.0, %v1003_v37  ;;  %v2735_v26 = vpop.eup %2734 }
 0x294   : > { %v1544_v32 = vmul.f32 %v2731_v3, %v1384_v62  ;;  %v1642_v33 = vsub.f32 0.0, %v1578_v50  ;;  %v1671_v17 = vsel %vm1607_vm11, %v1639_v60, %v1575_v53  ;;  %v1271_v11 = vmul.f32 %v3500_v56, %v1239_v8  ;;  %v2737_v58 = vpop.eup %2736  ;;  %v3537_v43 = vpop.permute.xlu0 %610 }
 0x295   : > { %v1208_v55 = vmul.f32 %v3514_v27, %v1176_v19  ;;  %v1561_v62 = vmul.f32 %v2735_v26, %v1401_v47  ;;  %v1274_v23 = vmul.f32 %v3504_v2, %v1242_v38  ;;  %2744 = vrcp.f32 %v1035_v4  ;;  %v4211_v4 = vld [vmem:[#allocation7_spill] sm:$0xff] }
 0x296   : > { %v1576_v30 = vsub.f32 1.0, %v1544_v32  ;;  %v1674_v3 = vsel %vm1610_vm12, %v1642_v33, %v1578_v50  ;;  %v3533_v18 = vpop.eup %2738  ;;  %v1303_v0 = vadd.f32 -0.28449672, %v1271_v11  ;;  %v1703_v53 = vadd.f32 1.0, %v1671_v17 }
 0x297   : > { %v1706_v25 = vadd.f32 1.0, %v1674_v3  ;;  %v1240_v36 = vadd.f32 1.4214138, %v1208_v55  ;;  %v1593_v60 = vsub.f32 1.0, %v1561_v62  ;;  %vm1625_vm14 = vcmp.lt.f32.partialorder %v3399_v29, 0.0  ;;  %v2741_v37 = vpop.eup %2740 }
 0x298   : > { %v1640_v39 = vsub.f32 0.0, %v1576_v30  ;;  %v1306_v28 = vadd.f32 -0.28449672, %v1274_v23  ;;  %v1133_v10 = vmul.f32 1.0614054, %v3533_v18  ;;  %v1335_v32 = vmul.f32 %v3500_v56, %v1303_v0 }
 0x299   : > { %v3540_v47 = vmul.f32 %v1706_v25, %v3446_v45  ;;  %v1272_v55 = vmul.f32 %v3514_v27, %v1240_v36  ;;  %v2743_v8 = vpop.eup %2742  ;;  %v3549_v26 = vadd.f32 %v4211_v4, %v3537_v43  ;;  %v1495_v1 = vmul.f32 1.442695, %v1453_v51 }
 0x29a   : > { %v1672_v50 = vsel %vm1608_vm13, %v1640_v39, %v1576_v30  ;;  %v1338_v33 = vmul.f32 %v3504_v2, %v1306_v28  ;;  %v1165_v38 = vadd.f32 -1.4531521, %v1133_v10  ;;  %v1367_v17 = vadd.f32 0.2548296, %v1335_v32 }
 0x29b   : > { %4210 = vst [vmem:[#allocation19_spill] sm:$0xff] %v3540_v47  ;;  %v1704_v19 = vadd.f32 1.0, %v1672_v50  ;;  %v1304_v11 = vadd.f32 -0.28449672, %v1272_v55  ;;  %v3554_v30 = vmul.f32 %v1703_v53, %v3443_v6  ;;  %vm1623_vm15 = vcmp.lt.f32.partialorder %v3437_v41, 0.0  ;;  %v4212_v50 = vld [vmem:[#allocation8_spill] sm:$0xff] }
 0x29c   : > { %v1370_v62 = vadd.f32 0.2548296, %v1338_v33  ;;  %v1197_v23 = vmul.f32 %v3533_v18, %v1165_v38  ;;  %v1657_v25 = vsub.f32 0.0, %v1593_v60  ;;  %v1399_v39 = vmul.f32 %v3500_v56, %v1367_v17 }
 0x29d   : > { %v3557_v3 = vmul.f32 %v1704_v19, %v3456_v5  ;;  %v1336_v0 = vmul.f32 %v3514_v27, %v1304_v11  ;;  %v1419_v36 = vsub.f32 0.0, %v3512_v48  ;;  %v3568_v5 = vmul.f32 0.70710677, %v3549_v26 }
 0x29e   : > { %v1402_v6 = vmul.f32 %v3504_v2, %v1370_v62  ;;  %v1229_v53 = vadd.f32 1.4214138, %v1197_v23  ;;  %v1559_v28 = vmul.f32 %v2737_v58, %v1399_v39  ;;  %vm1626_vm0 = vcmp.lt.f32.partialorder %v3440_v44, 0.0 }
 0x29f   : > { %v1368_v10 = vadd.f32 0.2548296, %v1336_v0  ;;  %v3573_v56 = vadd.f32 %v4212_v50, %v3523_v21  ;;  %v3575_v32 = vpop.eup %2744  ;;  %2746 = vpow2.f32 %v1495_v1  ;;  %v974_v2 = vand.u32 2147483647, %v3568_v5 }
 0x2a0   : > { %v1562_v55 = vmul.f32 %v2741_v37, %v1402_v6  ;;  %v1261_v19 = vmul.f32 %v3533_v18, %v1229_v53  ;;  %v1689_v33 = vsel %vm1625_vm14, %v1657_v25, %v1593_v60  ;;  %v1591_v38 = vsub.f32 1.0, %v1559_v28 }
 0x2a1   : > { %v1400_v58 = vmul.f32 %v3514_v27, %v1368_v10  ;;  %v1131_v4 = vmul.f32 1.0614054, %v3575_v32  ;;  %v1451_v62 = vmul.f32 %v1419_v36, %v3512_v48  ;;  %v1006_v23 = vmul.f32 0.3275911, %v974_v2 }
 0x2a2   : > { %v1594_v17 = vsub.f32 1.0, %v1562_v55  ;;  %v1293_v11 = vadd.f32 -0.28449672, %v1261_v19  ;;  %v1655_v39 = vsub.f32 0.0, %v1591_v38  ;;  %v3585_v1 = vmul.f32 0.70710677, %v3573_v56 }
 0x2a3   : > { %v1560_v37 = vmul.f32 %v2743_v8, %v1400_v58  ;;  %v1163_v0 = vadd.f32 -1.4531521, %v1131_v4  ;;  %v1721_v6 = vadd.f32 1.0, %v1689_v33  ;;  %v1038_v60 = vadd.f32 1.0, %v1006_v23 }
 0x2a4   : > { %v1658_v53 = vsub.f32 0.0, %v1594_v17  ;;  %v1325_v29 = vmul.f32 %v3533_v18, %v1293_v11  ;;  %v1687_v27 = vsel %vm1623_vm15, %v1655_v39, %v1591_v38  ;;  %v972_v48 = vand.u32 2147483647, %v3585_v1 }
 0x2a5   : > { %v1592_v25 = vsub.f32 1.0, %v1560_v37  ;;  %v1195_v28 = vmul.f32 %v3575_v32, %v1163_v0  ;;  %v922_v36 = vmul.f32 0.5, %v3425_v14  ;;  %2748 = vrcp.f32 %v1038_v60  ;;  %v4218_v60 = vld [vmem:[#allocation10_spill] sm:$0xff] }
 0x2a6   : > { %v1690_v8 = vsel %vm1626_vm0, %v1658_v53, %v1594_v17  ;;  %v1357_v10 = vadd.f32 0.2548296, %v1325_v29  ;;  %v1491_v33 = vmul.f32 1.442695, %v1451_v62  ;;  %v919_v58 = vmul.f32 0.5, %v3421_v49 }
 0x2a7   : > { %v1722_v50 = vadd.f32 1.0, %v1690_v8  ;;  %v1656_v55 = vsub.f32 0.0, %v1592_v25  ;;  %v1227_v19 = vadd.f32 1.4214138, %v1195_v28  ;;  %v1719_v41 = vadd.f32 1.0, %v1687_v27  ;;  %v4219_v28 = vld [vmem:[#allocation11_spill] sm:$0xff] }
 0x2a8   : > { %vm1624_vm1 = vcmp.lt.f32.partialorder %v3459_v15, 0.0  ;;  %v1004_v38 = vmul.f32 0.3275911, %v972_v48  ;;  %v3598_v4 = vmul.f32 %v1721_v6, %v3491_v61  ;;  %v920_v23 = vmul.f32 0.5, %v3433_v35  ;;  %v4215_v61 = vld [vmem:[#allocation9_spill] sm:$0xff] }
 0x2a9   : > { %v3600_v11 = vmul.f32 %v1722_v50, %v922_v36  ;;  %v1688_v14 = vsel %vm1624_vm1, %v1656_v55, %v1592_v25  ;;  %v1259_v44 = vmul.f32 %v3575_v32, %v1227_v19  ;;  %v2747_v17 = vpop.eup %2746  ;;  %v1389_v62 = vmul.f32 %v3533_v18, %v1357_v10  ;;  %v3711_v25 = vpop.permute.xlu0 %620 }
 0x2aa   : > { %4213 = vst [vmem:[#allocation7_spill] sm:$0xff] %v3598_v4  ;;  %v1720_v39 = vadd.f32 1.0, %v1688_v14  ;;  %v1036_v37 = vadd.f32 1.0, %v1004_v38  ;;  %2750 = vpow2.f32 %v1491_v33  ;;  %v3609_v0 = vadd.f32 %v4215_v61, %v3452_v13  ;;  %v3645_v61 = vpop.permute.xlu1 %615 }
 0x2ab   : > { %4214 = vst [vmem:[#allocation8_spill] sm:$0xff] %v3600_v11  ;;  %v1291_v15 = vadd.f32 -0.28449672, %v1259_v44  ;;  %v3611_v6 = vmul.f32 %v1719_v41, %v919_v58  ;;  %v1422_v29 = vsub.f32 0.0, %v974_v2  ;;  %v3621_v27 = vadd.f32 %v4218_v60, %v3417_v63 }
 0x2ac   : > { %v3613_v53 = vmul.f32 %v1720_v39, %v920_v23  ;;  %2752 = vrcp.f32 %v1036_v37  ;;  %v3617_v18 = vmul.f32 0.70710677, %v3609_v0  ;;  %v1549_v13 = vmul.f32 %v2747_v17, %v1389_v62 }
 0x2ad   : > { %4216 = vst [vmem:[#allocation9_spill] sm:$0xff] %v3611_v6  ;;  %v1323_v35 = vmul.f32 %v3575_v32, %v1291_v15  ;;  %v3627_v36 = vadd.f32 %v4219_v28, %v3537_v43  ;;  %v1454_v55 = vmul.f32 %v1422_v29, %v974_v2  ;;  %v1420_v19 = vsub.f32 0.0, %v972_v48 }
 0x2ae   : > { %4217 = vst [vmem:[#allocation20_spill] sm:$0xff] %v3613_v53  ;;  %v989_v10 = vand.u32 2147483647, %v3617_v18  ;;  %v3633_v33 = vmul.f32 0.70710677, %v3621_v27  ;;  %v1581_v38 = vsub.f32 1.0, %v1549_v13 }
 0x2af   : > { %v1355_v8 = vadd.f32 0.2548296, %v1323_v35  ;;  %v3630_v50 = vpop.eup %2748  ;;  %v3636_v63 = vmul.f32 0.70710677, %v3627_v36  ;;  %v1497_v23 = vmul.f32 1.442695, %v1454_v55  ;;  %v1452_v39 = vmul.f32 %v1420_v19, %v972_v48 }
 0x2b0   : > { %v1134_v58 = vmul.f32 1.0614054, %v3630_v50  ;;  %v1021_v41 = vmul.f32 0.3275911, %v989_v10  ;;  %v987_v14 = vand.u32 2147483647, %v3633_v33 }
 0x2b1   : > { %v1387_v43 = vmul.f32 %v3575_v32, %v1355_v8  ;;  %v3642_v44 = vand.u32 2147483647, %v3636_v63  ;;  %v909_v29 = vmul.f32 0.5, %v3464_v31  ;;  %vm1613_vm2 = vcmp.lt.f32.partialorder %v3475_v40, 0.0 }
 0x2b2   : > { %v1166_v17 = vadd.f32 -1.4531521, %v1134_v58  ;;  %v1053_v2 = vadd.f32 1.0, %v1021_v41  ;;  %v1019_v62 = vmul.f32 0.3275911, %v987_v14  ;;  %v1645_v60 = vsub.f32 0.0, %v1581_v38 }
 0x2b3   : > { %v1022_v37 = vmul.f32 0.3275911, %v3642_v44  ;;  %v1437_v28 = vsub.f32 0.0, %v989_v10  ;;  %v3655_v8 = vmul.f32 0.5, %v3485_v20  ;;  %v1493_v31 = vmul.f32 1.442695, %v1452_v39 }
 0x2b4   : > { %v2751_v15 = vpop.eup %2750  ;;  %v1198_v32 = vmul.f32 %v3630_v50, %v1166_v17  ;;  %2754 = vrcp.f32 %v1053_v2  ;;  %v1051_v48 = vadd.f32 1.0, %v1019_v62  ;;  %v1435_v41 = vsub.f32 0.0, %v987_v14  ;;  %v4220_v17 = vld [vmem:[#allocation12_spill] sm:$0xff] }
 0x2b5   : > { %v3652_v13 = vmul.f32 %v2751_v15, %v1387_v43  ;;  %v1054_v58 = vadd.f32 1.0, %v1022_v37  ;;  %2756 = vpow2.f32 %v1497_v23  ;;  %v3660_v2 = vadd.f32 %v4220_v17, %v3523_v21  ;;  %v3672_v37 = vpop.permute.xlu1 %625 }
 0x2b6   : > { %v3650_v35 = vpop.eup %2752  ;;  %v1230_v55 = vadd.f32 1.4214138, %v1198_v32  ;;  %v3663_v49 = vmul.f32 0.5, %v3549_v26  ;;  %2758 = vrcp.f32 %v1051_v48  ;;  %v1677_v20 = vsel %vm1613_vm2, %v1645_v60, %v1581_v38  ;;  %v4222_v48 = vld [vmem:[#allocation14_spill] sm:$0xff] }
 0x2b7   : > { %v1132_v19 = vmul.f32 1.0614054, %v3650_v35  ;;  %v1579_v15 = vsub.f32 1.0, %v3652_v13  ;;  %v3670_v23 = vmul.f32 0.5, %v3573_v56  ;;  %v1469_v39 = vmul.f32 %v1437_v28, %v989_v10  ;;  %v4221_v56 = vld [vmem:[#allocation13_spill] sm:$0xff] }
 0x2b8   : > { %v1262_v43 = vmul.f32 %v3630_v50, %v1230_v55  ;;  %vm1611_vm3 = vcmp.lt.f32.partialorder %v3498_v9, 0.0  ;;  %2760 = vrcp.f32 %v1054_v58  ;;  %v3677_v32 = vmul.f32 0.70710677, %v3660_v2 }
 0x2b9   : > { %v1164_v62 = vadd.f32 -1.4531521, %v1132_v19  ;;  %2762 = vpow2.f32 %v1493_v31  ;;  %v3680_v40 = vmul.f32 0.5, %v3609_v0  ;;  %v1467_v38 = vmul.f32 %v1435_v41, %v987_v14 }
 0x2ba   : > { %v1294_v21 = vadd.f32 -0.28449672, %v1262_v43  ;;  %v3684_v60 = vadd.f32 %v4221_v56, %v3672_v37  ;;  %v3688_v28 = vand.u32 2147483647, %v3677_v32  ;;  %v3692_v55 = vadd.f32 %v4222_v48, %v3645_v61 }
 0x2bb   : > { %v1196_v26 = vmul.f32 %v3650_v35, %v1164_v62  ;;  %v1709_v19 = vadd.f32 1.0, %v1677_v20  ;;  %v1527_v58 = vmul.f32 1.442695, %v1469_v39  ;;  %v1438_v0 = vsub.f32 0.0, %v3642_v44 }
 0x2bc   : > { %v1326_v10 = vmul.f32 %v3630_v50, %v1294_v21  ;;  %4223 = vst [vmem:[#allocation10_spill] sm:$0xff] %v3692_v55  ;;  %v3696_v14 = vmul.f32 0.70710677, %v3684_v60  ;;  %v1643_v41 = vsub.f32 0.0, %v1579_v15  ;;  %v1020_v62 = vmul.f32 0.3275911, %v3688_v28 }
 0x2bd   : > { %v1228_v13 = vadd.f32 1.4214138, %v1196_v26  ;;  %vm1614_vm4 = vcmp.lt.f32.partialorder %v3568_v5, 0.0  ;;  %v1523_v26 = vmul.f32 1.442695, %v1467_v38  ;;  %2764 = vpow2.f32 %v1527_v58 }
 0x2be   : > { %v3698_v31 = vpop.eup %2754  ;;  %v1358_v17 = vadd.f32 0.2548296, %v1326_v10  ;;  %v3705_v20 = vand.u32 2147483647, %v3696_v14  ;;  %v1052_v48 = vadd.f32 1.0, %v1020_v62  ;;  %vm1612_vm5 = vcmp.lt.f32.partialorder %v3585_v1, 0.0 }
 0x2bf   : > { %v1260_v43 = vmul.f32 %v3650_v35, %v1228_v13  ;;  %v1149_v21 = vmul.f32 1.0614054, %v3698_v31  ;;  %v3709_v45 = vmul.f32 0.70710677, %v3692_v55  ;;  %v2757_v10 = vpop.eup %2756  ;;  %v3713_v13 = vmul.f32 %v1709_v19, %v909_v29  ;;  %v4225_v55 = vld [vmem:[#allocation15_spill] sm:$0xff] }
 0x2c0   : > { %v1390_v39 = vmul.f32 %v3630_v50, %v1358_v17  ;;  %v1009_v4 = vmul.f32 0.3275911, %v3705_v20  ;;  %v3716_v38 = vpop.eup %2758  ;;  %v1470_v50 = vmul.f32 %v1438_v0, %v3642_v44  ;;  %2766 = vrcp.f32 %v1052_v48 }
 0x2c1   : > { %v1292_v56 = vadd.f32 -0.28449672, %v1260_v43  ;;  %4224 = vst [vmem:[#allocation11_spill] sm:$0xff] %v3709_v45  ;;  %v1181_v51 = vadd.f32 -1.4531521, %v1149_v21  ;;  %v1675_v17 = vsel %vm1611_vm3, %v1643_v41, %v1579_v15  ;;  %2768 = vpow2.f32 %v1523_v26 }
 0x2c2   : > { %v1550_v11 = vmul.f32 %v2757_v10, %v1390_v39  ;;  %v1147_v29 = vmul.f32 1.0614054, %v3716_v38  ;;  %v1041_v19 = vadd.f32 1.0, %v1009_v4  ;;  %v3724_v62 = vpop.eup %2760  ;;  %v3727_v39 = vand.u32 2147483647, %v3709_v45 }
 0x2c3   : > { %v1324_v54 = vmul.f32 %v3650_v35, %v1292_v56  ;;  %v1213_v43 = vmul.f32 %v3698_v31, %v1181_v51  ;;  %v2763_v56 = vpop.eup %2762  ;;  %v1150_v9 = vmul.f32 1.0614054, %v3724_v62  ;;  %v1436_v4 = vsub.f32 0.0, %v3688_v28 }
 0x2c4   : > { %v1582_v58 = vsub.f32 1.0, %v1550_v11  ;;  %v1179_v0 = vadd.f32 -1.4531521, %v1147_v29  ;;  %2770 = vrcp.f32 %v1041_v19  ;;  %v1007_v11 = vmul.f32 0.3275911, %v3727_v39 }
 0x2c5   : > { %v1356_v21 = vadd.f32 0.2548296, %v1324_v54  ;;  %v1245_v44 = vadd.f32 1.4214138, %v1213_v43  ;;  %v3734_v54 = vpop.permute.xlu0 %630  ;;  %v1182_v48 = vadd.f32 -1.4531521, %v1150_v9 }
 0x2c6   : > { %v1646_v51 = vsub.f32 0.0, %v1582_v58  ;;  %v1211_v26 = vmul.f32 %v3716_v38, %v1179_v0  ;;  %v1529_v10 = vmul.f32 1.442695, %v1470_v50  ;;  %v1039_v19 = vadd.f32 1.0, %v1007_v11 }
 0x2c7   : > { %v1388_v15 = vmul.f32 %v3650_v35, %v1356_v21  ;;  %v1277_v41 = vmul.f32 %v3698_v31, %v1245_v44  ;;  %v3742_v35 = vadd.f32 %v4225_v55, %v3734_v54  ;;  %v1214_v6 = vmul.f32 %v3724_v62, %v1182_v48  ;;  %v2765_v50 = vpop.eup %2764 }
 0x2c8   : > { %v1678_v43 = vsel %vm1614_vm4, %v1646_v51, %v1582_v58  ;;  %v1243_v47 = vadd.f32 1.4214138, %v1211_v26  ;;  %v1707_v53 = vadd.f32 1.0, %v1675_v17  ;;  %v1468_v0 = vmul.f32 %v1436_v4, %v3688_v28 }
 0x2c9   : > { %v1548_v29 = vmul.f32 %v2763_v56, %v1388_v15  ;;  %v1710_v21 = vadd.f32 1.0, %v1678_v43  ;;  %v1309_v45 = vadd.f32 -0.28449672, %v1277_v41  ;;  %2772 = vrcp.f32 %v1039_v19 }
 0x2ca   : > { %v1275_v56 = vmul.f32 %v3716_v38, %v1243_v47  ;;  %v1246_v55 = vadd.f32 1.4214138, %v1214_v6  ;;  %v3751_v9 = vpop.eup %2766  ;;  %2774 = vpow2.f32 %v1529_v10  ;;  %v1425_v15 = vsub.f32 0.0, %v3705_v20 }
 0x2cb   : > { %v1580_v44 = vsub.f32 1.0, %v1548_v29  ;;  %v3747_v5 = vmul.f32 %v1710_v21, %v3663_v49  ;;  %v1341_v58 = vmul.f32 %v3698_v31, %v1309_v45  ;;  %v3755_v17 = vmul.f32 0.70710677, %v3742_v35  ;;  %v2769_v45 = vpop.eup %2768 }
 0x2cc   : > { %v1307_v49 = vadd.f32 -0.28449672, %v1275_v56  ;;  %v1278_v11 = vmul.f32 %v3724_v62, %v1246_v55  ;;  %v1148_v6 = vmul.f32 1.0614054, %v3751_v9  ;;  %v1525_v41 = vmul.f32 1.442695, %v1468_v0 }
 0x2cd   : > { %v1644_v51 = vsub.f32 0.0, %v1580_v44  ;;  %v1373_v4 = vadd.f32 0.2548296, %v1341_v58  ;;  %v978_v26 = vand.u32 2147483647, %v3755_v17  ;;  %v3769_v21 = vmul.f32 %v1707_v53, %v3655_v8 }
 0x2ce   : > { %v3764_v48 = vpop.eup %2770  ;;  %v1339_v29 = vmul.f32 %v3716_v38, %v1307_v49  ;;  %v1310_v19 = vadd.f32 -0.28449672, %v1278_v11  ;;  %v1180_v58 = vadd.f32 -1.4531521, %v1148_v6  ;;  %vm1629_vm6 = vcmp.lt.f32.partialorder %v3617_v18, 0.0 }
 0x2cf   : > { %v1676_v47 = vsel %vm1612_vm5, %v1644_v51, %v1580_v44  ;;  %v1405_v43 = vmul.f32 %v3698_v31, %v1373_v4  ;;  %v1137_v1 = vmul.f32 1.0614054, %v3764_v48  ;;  %v1010_v44 = vmul.f32 0.3275911, %v978_v26 }
 0x2d0   : > { %v1708_v10 = vadd.f32 1.0, %v1676_v47  ;;  %v1371_v55 = vadd.f32 0.2548296, %v1339_v29  ;;  %v1342_v51 = vmul.f32 %v3724_v62, %v1310_v19  ;;  %v1212_v47 = vmul.f32 %v3751_v9, %v1180_v58  ;;  %v4226_v58 = vld [vmem:[#allocation16_spill] sm:$0xff] }
 0x2d1   : > { %v1565_v0 = vmul.f32 %v2765_v50, %v1405_v43  ;;  %v1169_v31 = vadd.f32 -1.4531521, %v1137_v1  ;;  %v1457_v4 = vmul.f32 %v1425_v15, %v3705_v20  ;;  %v1042_v49 = vadd.f32 1.0, %v1010_v44 }
 0x2d2   : > { %v3773_v56 = vmul.f32 %v1708_v10, %v3670_v23  ;;  %v1403_v11 = vmul.f32 %v3716_v38, %v1371_v55  ;;  %v1374_v6 = vadd.f32 0.2548296, %v1342_v51  ;;  %v1244_v23 = vadd.f32 1.4214138, %v1212_v47 }
 0x2d3   : > { %v1597_v8 = vsub.f32 1.0, %v1565_v0  ;;  %v3781_v28 = vpop.eup %2772  ;;  %v1201_v50 = vmul.f32 %v3764_v48, %v1169_v31  ;;  %2776 = vrcp.f32 %v1042_v49  ;;  %v3790_v1 = vadd.f32 %v4226_v58, %v3711_v25 }
 0x2d4   : > { %v1767_v53 = vpack.c.bf16 %v3773_v56, %v3769_v21  ;;  %v1406_v43 = vmul.f32 %v3724_v62, %v1374_v6  ;;  %2778 = vpow2.f32 %v1525_v41  ;;  %v1135_v20 = vmul.f32 1.0614054, %v3781_v28  ;;  %v2775_v15 = vpop.eup %2774 }
 0x2d5   : > { %v1661_v10 = vsub.f32 0.0, %v1597_v8  ;;  %v1563_v29 = vmul.f32 %v2769_v45, %v1403_v11  ;;  %v1276_v19 = vmul.f32 %v3751_v9, %v1244_v23  ;;  %v1233_v38 = vadd.f32 1.4214138, %v1201_v50 }
 0x2d6   : > { %v1566_v44 = vmul.f32 %v2775_v15, %v1406_v43  ;;  %v1503_v0 = vmul.f32 1.442695, %v1457_v4  ;;  %v1167_v55 = vadd.f32 -1.4531521, %v1135_v20  ;;  %v1426_v51 = vsub.f32 0.0, %v978_v26 }
 0x2d7   : > { %v1693_v47 = vsel %vm1629_vm6, %v1661_v10, %v1597_v8  ;;  %v926_v62 = vmul.f32 0.5, %v3627_v36  ;;  %v1308_v41 = vadd.f32 -0.28449672, %v1276_v19  ;;  %v1265_v31 = vmul.f32 %v3764_v48, %v1233_v38 }
 0x2d8   : > { %v1598_v45 = vsub.f32 1.0, %v1566_v44  ;;  %vm1630_vm7 = vcmp.lt.f32.partialorder %v3636_v63, 0.0  ;;  %v1199_v49 = vmul.f32 %v3781_v28, %v1167_v55  ;;  %v3800_v11 = vadd.f32 %v3315_v12, %v3672_v37 }
 0x2d9   : > { %v1595_v4 = vsub.f32 1.0, %v1563_v29  ;;  %v1340_v6 = vmul.f32 %v3751_v9, %v1308_v41  ;;  %v1297_v23 = vadd.f32 -0.28449672, %v1265_v31  ;;  %v3804_v18 = vmul.f32 0.70710677, %v3790_v1 }
 0x2da   : > { %v1725_v36 = vadd.f32 1.0, %v1693_v47  ;;  %v1662_v8 = vsub.f32 0.0, %v1598_v45  ;;  %2780 = vpow2.f32 %v1503_v0  ;;  %v1458_v50 = vmul.f32 %v1426_v51, %v978_v26 }
 0x2db   : > { %v1372_v10 = vadd.f32 0.2548296, %v1340_v6  ;;  %v1329_v43 = vmul.f32 %v3764_v48, %v1297_v23  ;;  %v1231_v20 = vadd.f32 1.4214138, %v1199_v49  ;;  %v976_v15 = vand.u32 2147483647, %v3804_v18 }
 0x2dc   : > { %vm1627_vm8 = vcmp.lt.f32.partialorder %v3633_v33, 0.0  ;;  %v1694_v12 = vsel %vm1630_vm7, %v1662_v8, %v1598_v45  ;;  %v1423_v37 = vsub.f32 0.0, %v3727_v39  ;;  %v3813_v29 = vmul.f32 0.70710677, %v3800_v11 }
 0x2dd   : > { %v3815_v19 = vpop.eup %2776  ;;  %v1659_v38 = vsub.f32 0.0, %v1595_v4  ;;  %v1726_v26 = vadd.f32 1.0, %v1694_v12  ;;  %v1404_v58 = vmul.f32 %v3751_v9, %v1372_v10  ;;  %v1361_v44 = vadd.f32 0.2548296, %v1329_v43 }
 0x2de   : > { %v2779_v0 = vpop.eup %2778  ;;  %v1138_v55 = vmul.f32 1.0614054, %v3815_v19  ;;  %v1505_v51 = vmul.f32 1.442695, %v1458_v50  ;;  %v1008_v47 = vmul.f32 0.3275911, %v976_v15  ;;  %v3820_v63 = vmul.f32 %v1725_v36, %v3680_v40 }
 0x2df   : > { %v3822_v41 = vmul.f32 %v1726_v26, %v926_v62  ;;  %v1564_v31 = vmul.f32 %v2779_v0, %v1404_v58  ;;  %v1263_v45 = vmul.f32 %v3781_v28, %v1231_v20  ;;  %v1455_v49 = vmul.f32 %v1423_v37, %v3727_v39 }
 0x2e0   : > { %v1170_v6 = vadd.f32 -1.4531521, %v1138_v55  ;;  %v1040_v23 = vadd.f32 1.0, %v1008_v47  ;;  %v3827_v9 = vand.u32 2147483647, %v3813_v29  ;;  %v1691_v8 = vsel %vm1627_vm8, %v1659_v38, %v1595_v4 }
 0x2e1   : > { %v1776_v50 = vpack.c.bf16 %v3822_v41, %v3820_v63  ;;  %v1596_v40 = vsub.f32 1.0, %v1564_v31  ;;  %v1393_v62 = vmul.f32 %v3764_v48, %v1361_v44  ;;  %v923_v36 = vmul.f32 0.5, %v3621_v27 }
 0x2e2   : > { %v1202_v10 = vmul.f32 %v3815_v19, %v1170_v6  ;;  %2782 = vrcp.f32 %v1040_v23  ;;  %v1025_v39 = vmul.f32 0.3275911, %v3827_v9  ;;  %vm1628_vm9 = vcmp.lt.f32.partialorder %v3677_v32, 0.0 }
 0x2e3   : > { %v1660_v43 = vsub.f32 0.0, %v1596_v40  ;;  %v1295_v20 = vadd.f32 -0.28449672, %v1263_v45  ;;  %v3840_v33 = vadd.f32 %v3340_v59, %v3645_v61  ;;  %v1723_v12 = vadd.f32 1.0, %v1691_v8 }
 0x2e4   : > { %v2781_v4 = vpop.eup %2780  ;;  %v1499_v37 = vmul.f32 1.442695, %v1455_v49  ;;  %v1234_v38 = vadd.f32 1.4214138, %v1202_v10  ;;  %v1057_v48 = vadd.f32 1.0, %v1025_v39  ;;  %v924_v27 = vmul.f32 0.5, %v3660_v2 }
 0x2e5   : > { %v1692_v26 = vsel %vm1628_vm9, %v1660_v43, %v1596_v40  ;;  %v1553_v58 = vmul.f32 %v2781_v4, %v1393_v62  ;;  %2784 = vpow2.f32 %v1505_v51  ;;  %v1424_v32 = vsub.f32 0.0, %v976_v15 }
 0x2e6   : > { %v1724_v44 = vadd.f32 1.0, %v1692_v26  ;;  %v1266_v0 = vmul.f32 %v3815_v19, %v1234_v38  ;;  %2786 = vrcp.f32 %v1057_v48  ;;  %v1327_v55 = vmul.f32 %v3781_v28, %v1295_v20 }
 0x2e7   : > { %v3846_v59 = vmul.f32 0.70710677, %v3840_v33  ;;  %v3848_v61 = vmul.f32 %v1723_v12, %v923_v36  ;;  %2788 = vpow2.f32 %v1499_v37  ;;  %v1585_v2 = vsub.f32 1.0, %v1553_v58 }
 0x2e8   : > { %v3850_v47 = vmul.f32 %v1724_v44, %v924_v27  ;;  %v1298_v31 = vadd.f32 -0.28449672, %v1266_v0  ;;  %v3857_v51 = vadd.f32 %v3365_v24, %v3734_v54  ;;  %v1456_v23 = vmul.f32 %v1424_v32, %v976_v15 }
 0x2e9   : > { %v3853_v45 = vand.u32 2147483647, %v3846_v59  ;;  %v1359_v8 = vadd.f32 0.2548296, %v1327_v55  ;;  %v3870_v39 = vadd.f32 %v3385_v42, %v3711_v25  ;;  %v1649_v24 = vsub.f32 0.0, %v1585_v2  ;;  %v4230_v55 = vld [vmem:[#allocation17_spill] sm:$0xff] }
 0x2ea   : > { %v1775_v49 = vpack.c.bf16 %v3850_v47, %v3848_v61  ;;  %v1330_v6 = vmul.f32 %v3815_v19, %v1298_v31  ;;  %v3864_v62 = vmul.f32 0.70710677, %v3857_v51  ;;  %v2885_v20 = vmov 0.0  }
 0x2eb   : > { %v1023_v40 = vmul.f32 0.3275911, %v3853_v45  ;;  %2482 = vmatprep.subr.bf16.mxu0 %v2885_v20  ;;  %2502 = vmatprep.subr.bf16.mxu1 %v2885_v20  ;;  %v1501_v4 = vmul.f32 1.442695, %v1456_v23  ;;  %v4227_v37 = vpack.c.bf16 %v3345_v22, %v3338_v7  ;;  %v4228_v42 = vpack.c.bf16 %v3409_v52, %v3407_v46 }
 0x2ec   : > { %v3866_v36 = vpop.eup %2782  ;;  %v1362_v10 = vadd.f32 0.2548296, %v1330_v6  ;;  %v3877_v12 = vand.u32 2147483647, %v3864_v62  ;;  %v1391_v38 = vmul.f32 %v3781_v28, %v1359_v8  ;;  %v1441_v27 = vsub.f32 0.0, %v3827_v9 }
 0x2ed   : > { %v1136_v54 = vmul.f32 1.0614054, %v3866_v36  ;;  %v1055_v43 = vadd.f32 1.0, %v1023_v40  ;;  %2483 = vmatpush3.bf16.msra.mxu0 %v4227_v37  ;;  %2503 = vmatpush3.bf16.msra.mxu1 %v4228_v42  ;;  %vm1617_vm10 = vcmp.lt.f32.partialorder %v3696_v14, 0.0  ;;  %v3894_v46 = vmul.f32 0.70710677, %v3870_v39 }
 0x2ee   : > { %v1394_v15 = vmul.f32 %v3815_v19, %v1362_v10  ;;  %2484 = vmatprep.subr.bf16.mxu0 %v2885_v20  ;;  %2504 = vmatprep.subr.bf16.mxu1 %v2885_v20  ;;  %v1026_v22 = vmul.f32 0.3275911, %v3877_v12  ;;  %v1681_v52 = vsel %vm1617_vm10, %v1649_v24, %v1585_v2  ;;  %v4229_v14 = vpack.c.bf16 %v3334_v57, %v3327_v16  ;;  %v4234_v37 = vld [vmem:[#allocation9_spill] sm:$0xff] }
 0x2ef   : > { %v2785_v25 = vpop.eup %2784  ;;  %v1168_v48 = vadd.f32 -1.4531521, %v1136_v54  ;;  %2790 = vrcp.f32 %v1055_v43  ;;  %v3899_v32 = vand.u32 2147483647, %v3894_v46  ;;  %v4231_v31 = vpack.c.bf16 %v3392_v34, %v4230_v55  ;;  %v4240_v55 = vld [vmem:[#allocation7_spill] sm:$0xff] }
 0x2f0   : > { %v3889_v19 = vpop.eup %2786  ;;  %v1554_v7 = vmul.f32 %v2785_v25, %v1394_v15  ;;  %2792 = vpow2.f32 %v1501_v4  ;;  %v1058_v0 = vadd.f32 1.0, %v1026_v22  ;;  %v1473_v8 = vmul.f32 %v1441_v27, %v3827_v9  ;;  %v4233_v4 = vld [vmem:[#allocation20_spill] sm:$0xff] }
 0x2f1   : > { %v1200_v28 = vmul.f32 %v3866_v36, %v1168_v48  ;;  %v1153_v26 = vmul.f32 1.0614054, %v3889_v19  ;;  %v2789_v58 = vpop.eup %2788  ;;  %2485 = vmatpush3.bf16.msra.mxu0 %v4229_v14  ;;  %2505 = vmatpush3.bf16.msra.mxu1 %v4231_v31  ;;  %v1713_v40 = vadd.f32 1.0, %v1681_v52  ;;  %v1024_v16 = vmul.f32 0.3275911, %v3899_v32  ;;  %v4239_v14 = vld [vmem:[#allocation8_spill] sm:$0xff] }
 0x2f2   : > { %v1586_v44 = vsub.f32 1.0, %v1554_v7  ;;  %v3907_v2 = vmul.f32 %v2789_v58, %v1391_v38  ;;  %2486 = vmatprep.subr.bf16.mxu0 %v2885_v20  ;;  %2506 = vmatprep.subr.bf16.mxu1 %v2885_v20  ;;  %2794 = vrcp.f32 %v1058_v0  ;;  %vm2886_vm11 = vmmov 0   ;;  %v4236_v58 = vld [vmem:[#allocation19_spill] sm:$0xff] }
 0x2f3   : > { %v1232_v6 = vadd.f32 1.4214138, %v1200_v28  ;;  %v1185_v23 = vadd.f32 -1.4531521, %v1153_v26  ;;  %2498 = vmatprep.mubr.msk.bf16.mxu0 %vm2886_vm11, %v2885_v20  ;;  %2518 = vmatprep.mubr.msk.bf16.mxu1 %vm2886_vm11, %v2885_v20  ;;  %vm1618_vm12 = vcmp.lt.f32.partialorder %v3755_v17, 0.0  ;;  %v1439_v9 = vsub.f32 0.0, %v3853_v45 }
 0x2f4   : > { %v1650_v10 = vsub.f32 0.0, %v1586_v44  ;;  %v913_v24 = vmul.f32 0.5, %v3684_v60  ;;  %v1056_v43 = vadd.f32 1.0, %v1024_v16  ;;  %v4232_v15 = vpack.c.bf16 %v3557_v3, %v3554_v30 }
 0x2f5   : > { %v1264_v57 = vmul.f32 %v3866_v36, %v1232_v6  ;;  %v1217_v34 = vmul.f32 %v3889_v19, %v1185_v23  ;;  %v4235_v42 = vpack.c.bf16 %v4233_v4, %v4234_v37  ;;  %v914_v17 = vmul.f32 0.5, %v3742_v35  ;;  %v4242_v4 = vld [vmem:[#allocation11_spill] sm:$0xff] }
 0x2f6   : > { %v1682_v54 = vsel %vm1618_vm12, %v1650_v10, %v1586_v44  ;;  %2487 = vmatpush3.bf16.msra.mxu0 %v4232_v15  ;;  %v3931_v60 = vmul.f32 %v1713_v40, %v913_v24  ;;  %v1583_v27 = vsub.f32 1.0, %v3907_v2  ;;  %v1535_v7 = vmul.f32 1.442695, %v1473_v8  ;;  %v4237_v44 = vld [vmem:[#allocation18_spill] sm:$0xff] }
 0x2f7   : > { %2507 = vmatpush3.bf16.msra.mxu1 %v4235_v42  ;;  %v1714_v25 = vadd.f32 1.0, %v1682_v54  ;;  %v1296_v38 = vadd.f32 -0.28449672, %v1264_v57  ;;  %v1249_v48 = vadd.f32 1.4214138, %v1217_v34  ;;  %2488 = vmatprep.subr.bf16.mxu0 %v2885_v20  ;;  %2796 = vrcp.f32 %v1056_v43 }
 0x2f8   : > { %2508 = vmatprep.subr.bf16.mxu1 %v2885_v20  ;;  %v1471_v52 = vmul.f32 %v1439_v9, %v3853_v45  ;;  %v1442_v26 = vsub.f32 0.0, %v3877_v12  ;;  %v4238_v0 = vpack.c.bf16 %v4236_v58, %v4237_v44  ;;  %v4241_v31 = vpack.c.bf16 %v4239_v14, %v4240_v55 }
 0x2f9   : > { %v3934_v30 = vpop.eup %2790  ;;  %v3936_v3 = vmul.f32 %v1714_v25, %v914_v17  ;;  %v1328_v22 = vmul.f32 %v3866_v36, %v1296_v38  ;;  %v1281_v35 = vmul.f32 %v3889_v19, %v1249_v48  ;;  %2798 = vpow2.f32 %v1535_v7 }
 0x2fa   : > { %v1151_v28 = vmul.f32 1.0614054, %v3934_v30  ;;  %2489 = vmatpush3.bf16.msra.mxu0 %v4238_v0  ;;  %v2793_v45 = vpop.eup %2792  ;;  %v1647_v40 = vsub.f32 0.0, %v1583_v27  ;;  %v1531_v57 = vmul.f32 1.442695, %v1471_v52  ;;  %v1474_v24 = vmul.f32 %v1442_v26, %v3877_v12 }
 0x2fb   : > { %2509 = vmatpush3.bf16.msra.mxu1 %v4241_v31  ;;  %v1770_v2 = vpack.c.bf16 %v3936_v3, %v3931_v60  ;;  %v1360_v6 = vadd.f32 0.2548296, %v1328_v22  ;;  %v1313_v23 = vadd.f32 -0.28449672, %v1281_v35  ;;  %2490 = vmatprep.subr.bf16.mxu0 %v2885_v20  ;;  %v1440_v54 = vsub.f32 0.0, %v3899_v32 }
 0x2fc   : > { %2510 = vmatprep.subr.bf16.mxu1 %v2885_v20  ;;  %v1183_v8 = vadd.f32 -1.4531521, %v1151_v28  ;;  %v3955_v34 = vpop.eup %2794  ;;  %vm1615_vm13 = vcmp.lt.f32.partialorder %v4242_v4, 0.0  ;;  %2800 = vpow2.f32 %v1531_v57  ;;  %v1537_v61 = vmul.f32 1.442695, %v1474_v24 }
 0x2fd   : > { %v1392_v10 = vmul.f32 %v3866_v36, %v1360_v6  ;;  %v1345_v16 = vmul.f32 %v3889_v19, %v1313_v23  ;;  %v1154_v15 = vmul.f32 1.0614054, %v3955_v34  ;;  %v1679_v37 = vsel %vm1615_vm13, %v1647_v40, %v1583_v27  ;;  %v4244_v27 = vld [vmem:[#allocation10_spill] sm:$0xff] }
 0x2fe   : > { %v1215_v9 = vmul.f32 %v3934_v30, %v1183_v8  ;;  %2491 = vmatpush3.bf16.msra.mxu0 %v1767_v53  ;;  %v1472_v47 = vmul.f32 %v1440_v54, %v3899_v32  ;;  %v911_v32 = vmul.f32 0.5, %v4244_v27  ;;  %v1711_v7 = vadd.f32 1.0, %v1679_v37 }
 0x2ff   : > { %2511 = vmatpush3.bf16.msra.mxu1 %v1775_v49  ;;  %v1552_v36 = vmul.f32 %v2793_v45, %v1392_v10  ;;  %v1377_v43 = vadd.f32 0.2548296, %v1345_v16  ;;  %2492 = vmatprep.subr.bf16.mxu0 %v2885_v20  ;;  %v1186_v21 = vadd.f32 -1.4531521, %v1154_v15  ;;  %v4243_v49 = vpack.c.bf16 %v3747_v5, %v3713_v13 }
 0x300   : > { %2512 = vmatprep.subr.bf16.mxu1 %v2885_v20  ;;  %v1247_v12 = vadd.f32 1.4214138, %v1215_v9  ;;  %vm1616_vm14 = vcmp.lt.f32.partialorder %v3804_v18, 0.0  ;;  %v912_v5 = vmul.f32 0.5, %v3790_v1  ;;  %2802 = vpow2.f32 %v1537_v61 }
 0x301   : > { %v1584_v42 = vsub.f32 1.0, %v1552_v36  ;;  %v2797_v56 = vpop.eup %2796  ;;  %v1409_v25 = vmul.f32 %v3889_v19, %v1377_v43  ;;  %v1218_v38 = vmul.f32 %v3955_v34, %v1186_v21  ;;  %v1533_v52 = vmul.f32 1.442695, %v1472_v47 }
 0x302   : > { %v1279_v53 = vmul.f32 %v3934_v30, %v1247_v12  ;;  %2493 = vmatpush3.bf16.msra.mxu0 %v4243_v49  ;;  %v1152_v48 = vmul.f32 1.0614054, %v2797_v56  ;;  %v1743_v44 = vmul.f32 %v1711_v7, %v911_v32  ;;  %vm1633_vm15 = vcmp.lt.f32.partialorder %v3813_v29, 0.0 }
 0x303   : > { %2513 = vmatpush3.bf16.msra.mxu1 %v1776_v50  ;;  %v1648_v17 = vsub.f32 0.0, %v1584_v42  ;;  %2494 = vmatprep.subr.bf16.mxu0 %v2885_v20  ;;  %v1250_v41 = vadd.f32 1.4214138, %v1218_v38  ;;  %v2799_v22 = vpop.eup %2798  ;;  %2804 = vpow2.f32 %v1533_v52  ;;  %vm1631_vm0 = vcmp.lt.f32.partialorder %v3846_v59, 0.0 }
 0x304   : > { %2514 = vmatprep.subr.bf16.mxu1 %v2885_v20  ;;  %v1311_v13 = vadd.f32 -0.28449672, %v1279_v53  ;;  %v1184_v50 = vadd.f32 -1.4531521, %v1152_v48  ;;  %v1569_v28 = vmul.f32 %v2799_v22, %v1409_v25  ;;  %vm1634_vm1 = vcmp.lt.f32.partialorder %v3864_v62, 0.0 }
 0x305   : > { %v1680_v63 = vsel %vm1616_vm14, %v1648_v17, %v1584_v42  ;;  %v1282_v26 = vmul.f32 %v3955_v34, %v1250_v41  ;;  %v929_v29 = vmul.f32 0.5, %v3800_v11  ;;  %v930_v47 = vmul.f32 0.5, %v3857_v51 }
 0x306   : > { %v1712_v19 = vadd.f32 1.0, %v1680_v63  ;;  %v1343_v35 = vmul.f32 %v3934_v30, %v1311_v13  ;;  %v1216_v58 = vmul.f32 %v2797_v56, %v1184_v50  ;;  %v2801_v6 = vpop.eup %2800  ;;  %v1601_v23 = vsub.f32 1.0, %v1569_v28  ;;  %v2818_v63 = vld [vmem:[%s3012_s24] sm:$0xff]  ;;  %v2819_v28 = vld [vmem:[%s3012_s24 + $0x8] sm:$0xff]  ;;  %s4127_s24 = scalar_lea.sflag [#allocation3], %s432_s16 }
 0x307   : > { %v1314_v18 = vadd.f32 -0.28449672, %v1282_v26  ;;  %vm1632_vm2 = vcmp.lt.f32.partialorder %v3894_v46, 0.0  ;;  %v927_v27 = vmul.f32 0.5, %v3840_v33  ;;  %v928_v62 = vmul.f32 0.5, %v3870_v39  ;;  %v1783_v33 = vpop.permute.xlu1 %1782 }
 0x308   : > { %v1744_v0 = vmul.f32 %v1712_v19, %v912_v5  ;;  %v1375_v14 = vadd.f32 0.2548296, %v1343_v35  ;;  %v1248_v55 = vadd.f32 1.4214138, %v1216_v58  ;;  %v1665_v57 = vsub.f32 0.0, %v1601_v23 }
 0x309   : > { %v1346_v45 = vmul.f32 %v3955_v34, %v1314_v18 }
 0x30a   : > { %v1769_v31 = vpack.c.bf16 %v1744_v0, %v1743_v44  ;;  %v1407_v1 = vmul.f32 %v3934_v30, %v1375_v14  ;;  %v1280_v8 = vmul.f32 %v2797_v56, %v1248_v55  ;;  %v2803_v36 = vpop.eup %2802  ;;  %v461_v30 = vld [vmem:[%s4175_s7] sm:$0xf]  ;;  %v1697_v4 = vsel %vm1633_vm15, %v1665_v57, %v1601_v23  ;;  %v2659_v0 = vld [vmem:[%s4177_s9 + $0x8] sm:$0xff]   ;;  %v2664_v57 = vld [vmem:[%s4177_s9 + $0x30] sm:$0xff]  }
 0x30b   : > { %v1378_v10 = vadd.f32 0.2548296, %v1346_v45  ;;  %v2658_v44 = vld [vmem:[%s4177_s9] sm:$0xff]   ;;  %v2660_v45 = vld [vmem:[%s4177_s9 + $0x10] sm:$0xff]  }
 0x30c   : > { %v1567_v40 = vmul.f32 %v2801_v6, %v1407_v1  ;;  %2495 = vmatpush3.bf16.msra.mxu0 %v1769_v31  ;;  %v1312_v16 = vadd.f32 -0.28449672, %v1280_v8 }
 0x30d   : > { %2496 = vmatprep.subr.bf16.mxu0 %v2885_v20  ;;  %v1410_v24 = vmul.f32 %v3955_v34, %v1378_v10  ;;  %v2805_v42 = vpop.eup %2804  ;;  %v2662_v10 = vld [vmem:[%s4177_s9 + $0x20] sm:$0xff]  }
 0x30e   : > { %v1599_v9 = vsub.f32 1.0, %v1567_v40  ;;  %v1344_v54 = vmul.f32 %v2797_v56, %v1312_v16  ;;  %v2661_v40 = vld [vmem:[%s4177_s9 + $0x18] sm:$0xff]   ;;  %v2663_v16 = vld [vmem:[%s4177_s9 + $0x28] sm:$0xff]  }
 0x30f   : > { %v1570_v43 = vmul.f32 %v2803_v36, %v1410_v24 }
 0x310   : > { %2497 = vmatpush3.bf16.msra.mxu0 %v1770_v2  ;;  %v1376_v15 = vadd.f32 0.2548296, %v1344_v54  ;;  %v1663_v12 = vsub.f32 0.0, %v1599_v9  ;;  %v1729_v2 = vadd.f32 1.0, %v1697_v4  ;;  %v2349_v4 = vld [vmem:[%s4172_s4] ss:$0 sm:$0xff] }
 0x311   : > { %2522 = vmatprep.subr.bf16.mxu0 %v2885_v20  ;;  %v1602_v37 = vsub.f32 1.0, %v1570_v43  ;;  %v2348_v43 = vld [vmem:[%s4171_s3] ss:$0 sm:$0xff] }
 0x312   : > { %v1408_v34 = vmul.f32 %v2797_v56, %v1376_v15  ;;  %v1695_v21 = vsel %vm1631_vm0, %v1663_v12, %v1599_v9  ;;  %v1761_v17 = vmul.f32 %v1729_v2, %v929_v29  ;;  %v2665_v9 = vld [vmem:[%s4177_s9 + $0x38] sm:$0xff]  }
 0x313   : > { %2499 = vmatmul.mubr.bf16.vlgmr.msra.gmra.mrb[16].mxu0 %v461_v30  ;;  %v1666_v60 = vsub.f32 0.0, %v1602_v37  ;;  %v1727_v25 = vadd.f32 1.0, %v1695_v21 }
 0x314   : > { %2538 = vmatprep.mubr.msk.bf16.mxu0 %vm2886_vm11, %v2885_v20  ;;  %v1568_v3 = vmul.f32 %v2805_v42, %v1408_v34  ;;  %2523 = vmatpush3.bf16.msra.mxu0 %v2658_v44 }
 0x315   : > { %v1698_v53 = vsel %vm1634_vm1, %v1666_v60, %v1602_v37  ;;  %v1759_v7 = vmul.f32 %v1727_v25, %v927_v27  ;;  %2524 = vmatprep.subr.bf16.mxu0 %v2885_v20  ;;  %v2670_v25 = vld [vmem:[%s4179_s11 + $0x20] sm:$0xff]   ;;  %v2673_v27 = vld [vmem:[%s4179_s11 + $0x38] sm:$0xff]  }
 0x316   : > { %v1600_v61 = vsub.f32 1.0, %v1568_v3  ;;  %v1730_v56 = vadd.f32 1.0, %v1698_v53 }
 0x318   : > { %v1664_v49 = vsub.f32 0.0, %v1600_v61  ;;  %v1762_v38 = vmul.f32 %v1730_v56, %v930_v47  ;;  %2525 = vmatpush3.bf16.msra.mxu0 %v2659_v0  ;;  %v2666_v47 = vld [vmem:[%s4179_s11] sm:$0xff]   ;;  %v2667_v56 = vld [vmem:[%s4179_s11 + $0x8] sm:$0xff]  }
 0x319   : > { %2526 = vmatprep.subr.bf16.mxu0 %v2885_v20 }
 0x31a   : > { %v1696_v48 = vsel %vm1632_vm2, %v1664_v49, %v1600_v61  ;;  %v1778_v59 = vpack.c.bf16 %v1762_v38, %v1761_v17  ;;  %v2668_v49 = vld [vmem:[%s4179_s11 + $0x10] sm:$0xff]   ;;  %v2669_v17 = vld [vmem:[%s4179_s11 + $0x18] sm:$0xff]   ;;  %v2671_v38 = vld [vmem:[%s4179_s11 + $0x28] sm:$0xff]  }
 0x31b   : > { %v1728_v32 = vadd.f32 1.0, %v1696_v48  ;;  %v2672_v48 = vld [vmem:[%s4179_s11 + $0x30] sm:$0xff]  }
 0x31c   : > { %2527 = vmatpush3.bf16.msra.mxu0 %v2660_v45 }
 0x31d   : > { %v1760_v13 = vmul.f32 %v1728_v32, %v928_v62  ;;  %2528 = vmatprep.subr.bf16.mxu0 %v2885_v20 }
 0x31f   : > { %v1777_v11 = vpack.c.bf16 %v1760_v13, %v1759_v7 }
 0x320   : > { %2529 = vmatpush3.bf16.msra.mxu0 %v2661_v40 }
 0x321   : > { %2515 = vmatpush3.bf16.msra.mxu1 %v1777_v11  ;;  %2530 = vmatprep.subr.bf16.mxu0 %v2885_v20 }
 0x322   : > { %2516 = vmatprep.subr.bf16.mxu1 %v2885_v20 }
 0x324   : > { %2531 = vmatpush3.bf16.msra.mxu0 %v2662_v10 }
 0x325   : > { %2517 = vmatpush3.bf16.msra.mxu1 %v1778_v59  ;;  %2532 = vmatprep.subr.bf16.mxu0 %v2885_v20  ;;  %v2350_v59 = vld [vmem:[%s4178_s10] ss:$0 sm:$0xff] }
 0x326   : > { %2542 = vmatprep.subr.bf16.mxu1 %v2885_v20 }
 0x328   : > { %2519 = vmatmul.mubr.bf16.vlgmr.msra.gmra.mrb[16].mxu1 %v461_v30  ;;  %2533 = vmatpush3.bf16.msra.mxu0 %v2663_v16 }
 0x329   : > { %2558 = vmatprep.mubr.msk.bf16.mxu1 %vm2886_vm11, %v2885_v20  ;;  %2543 = vmatpush3.bf16.msra.mxu1 %v2658_v44 }
 0x32a   : > { %2544 = vmatprep.subr.bf16.mxu1 %v2885_v20  ;;  %2534 = vmatprep.subr.bf16.mxu0 %v2885_v20 }
 0x32c   : > { %2535 = vmatpush3.bf16.msra.mxu0 %v2664_v57 }
 0x32d   : > { %2545 = vmatpush3.bf16.msra.mxu1 %v2659_v0  ;;  %2536 = vmatprep.subr.bf16.mxu0 %v2885_v20 }
 0x32e   : > { %2546 = vmatprep.subr.bf16.mxu1 %v2885_v20 }
 0x330   : > { %2537 = vmatpush3.bf16.msra.mxu0 %v2665_v9 }
 0x331   : > { %2547 = vmatpush3.bf16.msra.mxu1 %v2660_v45  ;;  %2562 = vmatprep.subr.bf16.mxu0 %v2885_v20 }
 0x332   : > { %2548 = vmatprep.subr.bf16.mxu1 %v2885_v20 }
 0x335   : > { %2549 = vmatpush3.bf16.msra.mxu1 %v2661_v40 }
 0x336   : > { %2550 = vmatprep.subr.bf16.mxu1 %v2885_v20 }
 0x339   : > { %2551 = vmatpush3.bf16.msra.mxu1 %v2662_v10 }
 0x33a   : > { %2552 = vmatprep.subr.bf16.mxu1 %v2885_v20 }
 0x33d   : > { %2553 = vmatpush3.bf16.msra.mxu1 %v2663_v16 }
 0x33e   : > { %2554 = vmatprep.subr.bf16.mxu1 %v2885_v20 }
 0x341   : > { %2555 = vmatpush3.bf16.msra.mxu1 %v2664_v57 }
 0x342   : > { %2556 = vmatprep.subr.bf16.mxu1 %v2885_v20 }
 0x345   : > { %2557 = vmatpush3.bf16.msra.mxu1 %v2665_v9 }
 0x346   : > { %2582 = vmatprep.subr.bf16.mxu1 %v2885_v20 }
 0x3e6   : > { %v1819_v51 = vpop.f32.mrb[16].mxu0 }
 0x3e7   : > { %v1820_v46 = vadd.f32 %v1819_v51, %v1783_v33  ;;  %v2500_v39 = vpop.f32.mrb[17].mxu0 }
 0x3e8   : > { %v1822_v5 = vpop.f32.mrb[18].mxu0 }
 0x3e9   : > { %v4013_v41 = vadd.f32 %v2818_v63, %v1820_v46  ;;  %v2501_v50 = vpop.f32.mrb[19].mxu0 }
 0x3eb   : > { %1869 = vadd.xlane.f32.xlu0 %v4013_v41 }
 0x3fb   : > { %v1859_v22 = vpop.f32.mrb[16].mxu1 }
 0x3fc   : > { %v1860_v19 = vadd.f32 %v1859_v22, %v1783_v33  ;;  %v2520_v35 = vpop.f32.mrb[17].mxu1 }
 0x3fd   : > { %v1862_v52 = vpop.f32.mrb[18].mxu1 }
 0x3fe   : > { %v4017_v26 = vadd.f32 %v2819_v28, %v1860_v19  ;;  %v2521_v58 = vpop.f32.mrb[19].mxu1 }
 0x400   : > { %1871 = vadd.xlane.f32.xlu1 %v4017_v26 }
 0x478   : > { %v1870_v14 = vpop.xlane.xlu0 %1869 }
 0x479   : > { %v1873_v18 = vmul.f32 0.0078125, %v1870_v14 }
 0x47b   : > { %v1875_v55 = vsub.f32 %v4013_v41, %v1873_v18 }
 0x47d   : > { %v1877_v31 = vmul.f32 %v1875_v55, %v1875_v55 }
 0x47f   : > { %1879 = vadd.xlane.f32.xlu0 %v1877_v31 }
 0x48d   : > { %v1872_v1 = vpop.xlane.xlu1 %1871 }
 0x48e   : > { %v1874_v6 = vmul.f32 0.0078125, %v1872_v1 }
 0x490   : > { %v1876_v23 = vsub.f32 %v4017_v26, %v1874_v6 }
 0x492   : > { %v1878_v8 = vmul.f32 %v1876_v23, %v1876_v23 }
 0x494   : > { %1881 = vadd.xlane.f32.xlu0 %v1878_v8 }
 0x50c   : > { %v1880_v24 = vpop.xlane.xlu0 %1879 }
 0x50d   : > { %v1883_v54 = vmul.f32 0.0078125, %v1880_v24 }
 0x50f   : > { %v1885_v36 = vadd.f32 1e-05, %v1883_v54 }
 0x511   : > { %2806 = vrsqrt.f32 %v1885_v36 }
 0x51b   : > { %v2807_v30 = vpop.eup %2806 }
 0x51c   : > { %v1889_v15 = vmul.f32 %v2807_v30, %v1875_v55 }
 0x51e   : > { %v1897_v12 = vmul.f32 %v2348_v43, %v1889_v15 }
 0x520   : > { %v1905_v37 = vadd.f32 %v2349_v4, %v1897_v12 }
 0x521   : > { %v1882_v34 = vpop.xlane.xlu0 %1881 }
 0x522   : > { %v1907_v42 = vpack.c.bf16 %v1905_v37, %v1905_v37  ;;  %v1884_v60 = vmul.f32 0.0078125, %v1882_v34 }
 0x524   : > { %2539 = vmatmul.mubr.bf16.vlgmr.msra.gmra.mrb[20].mxu0 %v1907_v42  ;;  %v1886_v3 = vadd.f32 1e-05, %v1884_v60 }
 0x525   : > { %2578 = vmatprep.mubr.msk.bf16.mxu0 %vm2886_vm11, %v2885_v20  ;;  %2563 = vmatpush3.bf16.msra.mxu0 %v2666_v47 }
 0x526   : > { %2808 = vrsqrt.f32 %v1886_v3  ;;  %2564 = vmatprep.subr.bf16.mxu0 %v2885_v20 }
 0x529   : > { %2565 = vmatpush3.bf16.msra.mxu0 %v2667_v56 }
 0x52a   : > { %2566 = vmatprep.subr.bf16.mxu0 %v2885_v20 }
 0x52d   : > { %2567 = vmatpush3.bf16.msra.mxu0 %v2668_v49 }
 0x52e   : > { %2568 = vmatprep.subr.bf16.mxu0 %v2885_v20 }
 0x530   : > { %v2809_v2 = vpop.eup %2808 }
 0x531   : > { %v1890_v21 = vmul.f32 %v2809_v2, %v1876_v23  ;;  %2569 = vmatpush3.bf16.msra.mxu0 %v2669_v17 }
 0x532   : > { %2570 = vmatprep.subr.bf16.mxu0 %v2885_v20 }
 0x533   : > { %v1898_v53 = vmul.f32 %v2348_v43, %v1890_v21 }
 0x535   : > { %v1906_v61 = vadd.f32 %v2349_v4, %v1898_v53  ;;  %2571 = vmatpush3.bf16.msra.mxu0 %v2670_v25 }
 0x536   : > { %2572 = vmatprep.subr.bf16.mxu0 %v2885_v20 }
 0x537   : > { %v1908_v29 = vpack.c.bf16 %v1906_v61, %v1906_v61 }
 0x539   : > { %2559 = vmatmul.mubr.bf16.vlgmr.msra.gmra.mrb[20].mxu1 %v1908_v29  ;;  %2573 = vmatpush3.bf16.msra.mxu0 %v2671_v38 }
 0x53a   : > { %2598 = vmatprep.mubr.msk.bf16.mxu1 %vm2886_vm11, %v2885_v20  ;;  %2583 = vmatpush3.bf16.msra.mxu1 %v2666_v47 }
 0x53b   : > { %2584 = vmatprep.subr.bf16.mxu1 %v2885_v20  ;;  %2574 = vmatprep.subr.bf16.mxu0 %v2885_v20 }
 0x53d   : > { %2575 = vmatpush3.bf16.msra.mxu0 %v2672_v48 }
 0x53e   : > { %2585 = vmatpush3.bf16.msra.mxu1 %v2667_v56  ;;  %2576 = vmatprep.subr.bf16.mxu0 %v2885_v20 }
 0x53f   : > { %2586 = vmatprep.subr.bf16.mxu1 %v2885_v20 }
 0x541   : > { %2577 = vmatpush3.bf16.msra.mxu0 %v2673_v27 }
 0x542   : > { %2587 = vmatpush3.bf16.msra.mxu1 %v2668_v49 }
 0x543   : > { %2588 = vmatprep.subr.bf16.mxu1 %v2885_v20 }
 0x546   : > { %2589 = vmatpush3.bf16.msra.mxu1 %v2669_v17 }
 0x547   : > { %2590 = vmatprep.subr.bf16.mxu1 %v2885_v20 }
 0x54a   : > { %2591 = vmatpush3.bf16.msra.mxu1 %v2670_v25 }
 0x54b   : > { %2592 = vmatprep.subr.bf16.mxu1 %v2885_v20 }
 0x54e   : > { %2593 = vmatpush3.bf16.msra.mxu1 %v2671_v38 }
 0x54f   : > { %2594 = vmatprep.subr.bf16.mxu1 %v2885_v20 }
 0x552   : > { %2595 = vmatpush3.bf16.msra.mxu1 %v2672_v48 }
 0x553   : > { %2596 = vmatprep.subr.bf16.mxu1 %v2885_v20 }
 0x556   : > { %2597 = vmatpush3.bf16.msra.mxu1 %v2673_v27 }
 0x5f7   : > { %v1998_v62 = vpop.f32.mrb[20].mxu0 }
 0x5f8   : > { %v1999_v32 = vadd.f32 %v2350_v59, %v1998_v62  ;;  %v2540_v7 = vpop.f32.mrb[21].mxu0  ;;  %v2359_v62 = vld [vmem:[%s4180_s12] ss:$0 sm:$0xff] }
 0x5f9   : > { %v2001_v13 = vpop.f32.mrb[22].mxu0 }
 0x5fa   : > { %v2046_v11 = vmul.f32 0.70710677, %v1999_v32  ;;  %v2541_v33 = vpop.f32.mrb[23].mxu0  ;;  %v2044_v4 = vmul.f32 0.5, %v1999_v32 }
 0x5fc   : > { %v2048_v51 = vand.u32 2147483647, %v2046_v11  ;;  %vm2088_vm3 = vcmp.lt.f32.partialorder %v2046_v11, 0.0 }
 0x5fe   : > { %v2050_v46 = vmul.f32 0.3275911, %v2048_v51  ;;  %v2076_v20 = vsub.f32 0.0, %v2048_v51 }
 0x600   : > { %v2052_v39 = vadd.f32 1.0, %v2050_v46  ;;  %v2078_v63 = vmul.f32 %v2076_v20, %v2048_v51 }
 0x602   : > { %2810 = vrcp.f32 %v2052_v39  ;;  %v2080_v58 = vmul.f32 1.442695, %v2078_v63 }
 0x604   : > { %2812 = vpow2.f32 %v2080_v58 }
 0x60c   : > { %v2811_v5 = vpop.eup %2810  ;;  %v2038_v22 = vpop.f32.mrb[20].mxu1 }
 0x60d   : > { %v2058_v50 = vmul.f32 1.0614054, %v2811_v5  ;;  %v2039_v19 = vadd.f32 %v2350_v59, %v2038_v22  ;;  %v2560_v35 = vpop.f32.mrb[21].mxu1 }
 0x60e   : > { %v2041_v28 = vpop.f32.mrb[22].mxu1  ;;  %v2813_v10 = vpop.eup %2812 }
 0x60f   : > { %v2060_v52 = vadd.f32 -1.4531521, %v2058_v50  ;;  %v2047_v44 = vmul.f32 0.70710677, %v2039_v19  ;;  %v2561_v0 = vpop.f32.mrb[23].mxu1  ;;  %v2045_v38 = vmul.f32 0.5, %v2039_v19 }
 0x611   : > { %v2062_v14 = vmul.f32 %v2811_v5, %v2060_v52  ;;  %v2049_v18 = vand.u32 2147483647, %v2047_v44  ;;  %vm2089_vm4 = vcmp.lt.f32.partialorder %v2047_v44, 0.0 }
 0x613   : > { %v2064_v55 = vadd.f32 1.4214138, %v2062_v14  ;;  %v2051_v31 = vmul.f32 0.3275911, %v2049_v18  ;;  %v2077_v16 = vsub.f32 0.0, %v2049_v18 }
 0x615   : > { %v2066_v1 = vmul.f32 %v2811_v5, %v2064_v55  ;;  %v2053_v6 = vadd.f32 1.0, %v2051_v31  ;;  %v2079_v54 = vmul.f32 %v2077_v16, %v2049_v18 }
 0x617   : > { %v2068_v23 = vadd.f32 -0.28449672, %v2066_v1  ;;  %2814 = vrcp.f32 %v2053_v6  ;;  %v2082_v37 = vmul.f32 1.442695, %v2079_v54 }
 0x619   : > { %v2070_v45 = vmul.f32 %v2811_v5, %v2068_v23  ;;  %2816 = vpow2.f32 %v2082_v37 }
 0x61b   : > { %v2072_v8 = vadd.f32 0.2548296, %v2070_v45 }
 0x61d   : > { %v2074_v40 = vmul.f32 %v2811_v5, %v2072_v8 }
 0x61f   : > { %v2084_v57 = vmul.f32 %v2813_v10, %v2074_v40 }
 0x621   : > { %v2086_v9 = vsub.f32 1.0, %v2084_v57  ;;  %v2815_v24 = vpop.eup %2814 }
 0x622   : > { %v2059_v30 = vmul.f32 1.0614054, %v2815_v24 }
 0x623   : > { %v2090_v36 = vsub.f32 0.0, %v2086_v9  ;;  %v2817_v47 = vpop.eup %2816 }
 0x624   : > { %v2061_v15 = vadd.f32 -1.4531521, %v2059_v30 }
 0x625   : > { %v2092_v43 = vsel %vm2088_vm3, %v2090_v36, %v2086_v9 }
 0x626   : > { %v2094_v12 = vadd.f32 1.0, %v2092_v43  ;;  %v2063_v34 = vmul.f32 %v2815_v24, %v2061_v15 }
 0x628   : > { %v2096_v42 = vmul.f32 %v2094_v12, %v2044_v4  ;;  %v2065_v60 = vadd.f32 1.4214138, %v2063_v34 }
 0x62a   : > { %v2098_v3 = vpack.c.bf16 %v2096_v42, %v2096_v42  ;;  %v2067_v2 = vmul.f32 %v2815_v24, %v2065_v60 }
 0x62c   : > { %2579 = vmatmul.mubr.bf16.vlgmr.msra.gmra.mrb[24].mxu0 %v2098_v3  ;;  %v2069_v21 = vadd.f32 -0.28449672, %v2067_v2 }
 0x62e   : > { %v2071_v53 = vmul.f32 %v2815_v24, %v2069_v21 }
 0x630   : > { %v2073_v61 = vadd.f32 0.2548296, %v2071_v53 }
 0x632   : > { %v2075_v29 = vmul.f32 %v2815_v24, %v2073_v61 }
 0x634   : > { %v2085_v56 = vmul.f32 %v2817_v47, %v2075_v29 }
 0x636   : > { %v2087_v49 = vsub.f32 1.0, %v2085_v56 }
 0x638   : > { %v2091_v17 = vsub.f32 0.0, %v2087_v49 }
 0x63a   : > { %v2093_v25 = vsel %vm2089_vm4, %v2091_v17, %v2087_v49 }
 0x63b   : > { %v2095_v48 = vadd.f32 1.0, %v2093_v25 }
 0x63d   : > { %v2097_v27 = vmul.f32 %v2095_v48, %v2045_v38 }
 0x63f   : > { %v2099_v59 = vpack.c.bf16 %v2097_v27, %v2097_v27 }
 0x641   : > { %2599 = vmatmul.mubr.bf16.vlgmr.msra.gmra.mrb[24].mxu1 %v2099_v59 }
 0x6ff   : > { %v2189_v32 = vpop.f32.mrb[24].mxu0 }
 0x700   : > { %v2190_v7 = vadd.f32 %v2359_v62, %v2189_v32  ;;  %v2580_v13 = vpop.f32.mrb[25].mxu0 }
 0x701   : > { %v2192_v11 = vpop.f32.mrb[26].mxu0 }
 0x702   : > { %v2235_v33 = vadd.f32 %v2190_v7, %v4013_v41  ;;  %v2581_v51 = vpop.f32.mrb[27].mxu0 }
 0x704   : > { %2237 = vst [vmem:[%s434_s21] sm:$0xff] %v2235_v33 }
 0x714   : > { %v2229_v46 = vpop.f32.mrb[24].mxu1 }
 0x715   : > { %v2230_v39 = vadd.f32 %v2359_v62, %v2229_v46  ;;  %v2600_v20 = vpop.f32.mrb[25].mxu1 }
 0x716   : > { %v2232_v5 = vpop.f32.mrb[26].mxu1 }
 0x717   : > { %v2236_v63 = vadd.f32 %v2230_v39, %v4017_v26  ;;  %v2601_v50 = vpop.f32.mrb[27].mxu1 }
 0x719   : > { %2238 = vst [vmem:[%s434_s21 + $0x8] sm:$0xff] %v2236_v63 }
 0x71a   : > { %2833 = shalt.err (!%p2830_p3)
}
 0x71b   : > { %s2834_s16 = scalar_lea.hbm %s4125_s15, 256  ;;  %s2838_s30 = scalar_lea.hbm %s4181_s13, 512 }
 0x71c   : > { %p2835_p4 = scmp.ne.s32.totalorder %s4125_s15, %s2834_s16  ;;  %p2839_p9 = scmp.lt.u32.totalorder %s4125_s15, %s4181_s13 }
 0x71d   : > { %p2840_p10 = scmp.lt.u32.totalorder %s2838_s30, %s2834_s16  ;;  %p2842_p12 = scmp.lt.u32.totalorder %s2834_s16, %s4125_s15 }
 0x71e   : > { %p2836_p7 = pnand %p2835_p4, %p2998_p5 }
 0x71f   : > { %p2841_p11 = por %p2840_p10, %p2839_p9 }
 0x720   : > { %p2837_p8 = pneg %p2836_p7 }
 0x721   : > { %p2843_p13 = por %p2842_p12, %p2841_p11 }
 0x723   : > { %p2844_p0 = pnand %p2843_p13, %p2837_p8 }
 0x725   : > { %2847 = shalt.err (!%p2844_p0)
}
 0x726   : > { %s2888_s29 = smov 128   ;;  %s2889_s27 = smov 8  }
 0x727   : > { %2604 = dma.vmem_to_hbm [thread:$0]  (%p2998_p5), %s4119_s22, 256, %s4125_s15, %s4127_s24, %s2888_s29, %s2888_s29, %s2889_s27  }
 0x728 PF: > { %p2610_p1 = scmp.ge.s32.totalorder %s2882_s28, 2  ;;  %s2268_s17 = sand.u32 1, %s2870_s25  }
 0x729   : > { %s2269_s16 = scalar_lea.sflag [#allocation3], %s2268_s17 }
 0x72a   : > { %p2607_p2 = pnand %p2610_p1, %p3002_p6 }
 0x72c   : > { %2865 = dma.done.wait (!%p2607_p2), %s2269_s16, 256  }
 0x72d   : > { %2867 = vsyncadd (!%p2607_p2), %s2269_s16, 4294967040  ;;  %s4245_s21 = sld [smem:[#allocation5_spill]]  ;;  %s4246_s27 = sld [smem:[#allocation6_spill]] }
 0x72e   : > { %p23_p3 = scmp.ge.s32.totalorder %s2985_s14, 4   ;;  %s4247_s25 = smov %s2874_s26 }
 0x72f   : > { %s4249_s28 = smov %s2985_s14 }
 0x730   :  { %25 = sbr.rel (!%p23_p3) target bundleno = 5 (0x5), region = 107 }
 0x733   : > { %s4248_s26 = smov %s4245_s21 }
 0x737   :  { %2274 = vsyncpa [#allocation3], 1 }
 0x738   :  { %2276 = vsyncpa [#allocation3 + $0x1], 1 }

</bundles_post_ra>
